<compile_context>
chip_gen: v7x
topology: tpu7x:2x2x1
jax: 0.10.0
libtpu: 0.0.40
codegen_flags: <defaults>
</compile_context>

<pallas_src>
import math

import jax
import jax.numpy as jnp
import numpy as np
from jax import lax
from jax.experimental import pallas as pl
from jax.experimental.pallas import tpu as pltpu

# ---------------- model hyperparameters (match the module defaults) ----------------
DIM = 32                      # channels
HEADS = 4
DIM_HEAD = 32
HIDDEN = HEADS * DIM_HEAD     # 128
FF_MULT = 4
INNER = DIM * FF_MULT         # 128
B, H, W = 2, 8, 8
N = H * W                     # 64 tokens per image
BN = B * N                    # 128 rows total
EPS = 1e-5                    # float32 LayerNorm eps (Python float -> jaxpr literal)
SCALE = DIM_HEAD ** (-0.5)


def _layernorm(x):
    # Channels-last LayerNorm, torch.var(unbiased=False), centered variance, no gain
    # (gains are folded into the following weight matrices at parameter-prep time).
    mean = jnp.mean(x, axis=-1, keepdims=True)
    xc = x - mean
    var = jnp.mean(xc * xc, axis=-1, keepdims=True)
    return xc * lax.rsqrt(var + EPS)


def _gelu_exact(x):
    # nn.GELU() default == exact erf formulation
    return 0.5 * x * (1.0 + lax.erf(x / math.sqrt(2.0)))


def transformer_kernel(x_ref, wqkv_ref, wout_ref, bout_ref,
                       w1_ref, b1_ref, w2_ref, b2_ref, o_ref):
    x = x_ref[...]                                            # (N, C) = (64, 32) f32

    # ---------------- Attention (prenorm; g1 + scale folded into wqkv) ----------------
    xn = _layernorm(x)
    qkv = jnp.dot(xn.astype(jnp.bfloat16), wqkv_ref[...],
                  preferred_element_type=jnp.float32)         # (64, 384) f32

    attn_out = None
    for h in range(HEADS):                                    # static, 4 iterations
        lo = h * DIM_HEAD
        qh = qkv[:, lo:lo + DIM_HEAD].astype(jnp.bfloat16)                      # (64, 32)
        kh = qkv[:, HIDDEN + lo:HIDDEN + lo + DIM_HEAD].astype(jnp.bfloat16)    # (64, 32)
        vh = qkv[:, 2 * HIDDEN + lo:2 * HIDDEN + lo + DIM_HEAD].astype(jnp.bfloat16)

        # Diagonal (per-head) score block only: (64,32)@(32,64) -> (64,64), f32 acc.
        sim = lax.dot_general(qh, kh, (((1,), (1,)), ((), ())),
                              preferred_element_type=jnp.float32)
        sim = sim - jnp.max(sim, axis=-1, keepdims=True)
        p = jnp.exp(sim)
        attn = p * (1.0 / jnp.sum(p, axis=-1, keepdims=True))                   # f32
        oh = jnp.dot(attn.astype(jnp.bfloat16), vh,
                     preferred_element_type=jnp.float32)                        # (64, 32)

        # Out-projection accumulated per head (head-major channel order of the module):
        part = jnp.dot(oh.astype(jnp.bfloat16), wout_ref[lo:lo + DIM_HEAD, :],
                       preferred_element_type=jnp.float32)                      # (64, 32)
        attn_out = part if attn_out is None else attn_out + part

    x1 = x + attn_out + bout_ref[...]                         # residual

    # ---------------- FeedForward (prenorm; g2 folded into w1) ----------------
    xn2 = _layernorm(x1)
    h1 = jnp.dot(xn2.astype(jnp.bfloat16), w1_ref[...],
                 preferred_element_type=jnp.float32) + b1_ref[...]
    h1 = _gelu_exact(h1)
    h2 = jnp.dot(h1.astype(jnp.bfloat16), w2_ref[...],
                 preferred_element_type=jnp.float32) + b2_ref[...]

    o_ref[...] = x1 + h2                                      # (64, 32) f32


def transformer_pallas(x_nchw, kp):
    b, c, h, w = x_nchw.shape
    assert (b, c, h, w) == (B, DIM, H, W)
    x_seq = jnp.transpose(x_nchw, (0, 2, 3, 1)).reshape(BN, c)       # (B*N, C)

    weights = (kp["wqkv"], kp["wout"], kp["bout"],
               kp["w1"], kp["b1"], kp["w2"], kp["b2"])

    def full_spec(arr):
        nd = arr.ndim
        return pl.BlockSpec(arr.shape, lambda i, _nd=nd: (0,) * _nd)

    out = pl.pallas_call(
        transformer_kernel,
        out_shape=jax.ShapeDtypeStruct((BN, DIM), jnp.float32),
        grid=(B,),
        in_specs=[pl.BlockSpec((N, DIM), lambda i: (i, 0))]
                 + [full_spec(a) for a in weights],
        out_specs=pl.BlockSpec((N, DIM), lambda i: (i, 0)),
        compiler_params=pltpu.CompilerParams(dimension_semantics=("parallel",)),
    )(x_seq, *weights)

    y = out.reshape(b, h, w, c)                 # same flat order as (B*N, C)
    return jnp.transpose(y, (0, 3, 1, 2))       # back to NCHW


# ---------------- parameters ----------------
def make_params(key):
    """Parameters in the native PyTorch layout (Conv2d 1x1 weights as (out, in))."""
    ks = jax.random.split(key, 10)
    return {
        "g1":   1.0 + 0.1 * jax.random.normal(ks[7], (1, DIM), jnp.float32),
        "wqkv": 0.05 * jax.random.normal(ks[0], (3 * HIDDEN, DIM), jnp.float32),
        "wout": 0.05 * jax.random.normal(ks[1], (DIM, HIDDEN), jnp.float32),
        "bout": 0.05 * jax.random.normal(ks[2], (1, DIM), jnp.float32),
        "g2":   1.0 + 0.1 * jax.random.normal(ks[8], (1, DIM), jnp.float32),
        "w1":   0.05 * jax.random.normal(ks[3], (INNER, DIM), jnp.float32),
        "b1":   0.05 * jax.random.normal(ks[4], (1, INNER), jnp.float32),
        "w2":   0.05 * jax.random.normal(ks[5], (DIM, INNER), jnp.float32),
        "b2":   0.05 * jax.random.normal(ks[6], (1, DIM), jnp.float32),
    }


def prepare_kernel_params(p):
    """Pre-transpose weights to (in, out), fold LN gains into wqkv / w1 rows, fold the
    attention scale into Wqkv's Q columns, and pre-cast matmul weights to bfloat16."""
    col_scale = np.concatenate([np.full(HIDDEN, SCALE, np.float32),
                                np.ones(2 * HIDDEN, np.float32)])
    wqkv = (p["wqkv"].T * p["g1"].reshape(DIM, 1)) * col_scale[None, :]   # (C, 3*HIDDEN)
    w1 = p["w1"].T * p["g2"].reshape(DIM, 1)                              # (C, INNER)
    return {
        "wqkv": wqkv.astype(jnp.bfloat16),
        "wout": p["wout"].T.astype(jnp.bfloat16),   # (HIDDEN, C), head-major rows
        "bout": p["bout"],                          # f32
        "w1":   w1.astype(jnp.bfloat16),
        "b1":   p["b1"],                            # f32
        "w2":   p["w2"].T.astype(jnp.bfloat16),     # (INNER, C)
        "b2":   p["b2"],                            # f32
    }


# ---------------- pure-JAX f32 reference (original weight layout) ----------------
def transformer_ref(x_nchw, p):
    x = jnp.transpose(x_nchw, (0, 2, 3, 1)).reshape(B, N, DIM)

    def ln(t, g):
        mean = jnp.mean(t, axis=-1, keepdims=True)
        var = jnp.mean((t - mean) ** 2, axis=-1, keepdims=True)
        return (t - mean) * lax.rsqrt(var + EPS) * g

    xn = ln(x, p["g1"])
    qkv = jnp.einsum("bnc,oc->bno", xn, p["wqkv"])
    q, k, v = jnp.split(qkv, 3, axis=-1)
    q = q.reshape(B, N, HEADS, DIM_HEAD) * SCALE
    k = k.reshape(B, N, HEADS, DIM_HEAD)
    v = v.reshape(B, N, HEADS, DIM_HEAD)
    sim = jnp.einsum("bihd,bjhd->bhij", q, k)
    attn = jax.nn.softmax(sim, axis=-1)
    o = jnp.einsum("bhij,bjhd->bihd", attn, v).reshape(B, N, HIDDEN)
    attn_out = jnp.einsum("bno,co->bnc", o, p["wout"]) + p["bout"]
    x1 = x + attn_out

    xn2 = ln(x1, p["g2"])
    h1 = jnp.einsum("bnc,oc->bno", xn2, p["w1"]) + p["b1"]
    h1 = 0.5 * h1 * (1.0 + lax.erf(h1 / math.sqrt(2.0)))
    h2 = jnp.einsum("bno,co->bnc", h1, p["w2"]) + p["b2"]
    x2 = x1 + h2
    return jnp.transpose(x2.reshape(B, H, W, DIM), (0, 3, 1, 2))


if __name__ == "__main__":
    key = jax.random.PRNGKey(0)
    kx, kp = jax.random.split(key)
    x = jax.random.normal(kx, (B, DIM, H, W), jnp.float32)   # NCHW, like the PyTorch module
    params = make_params(kp)
    kparams = prepare_kernel_params(params)

    out = jax.block_until_ready(transformer_pallas(x, kparams))
    ref = jax.block_until_ready(transformer_ref(x, params))

    # Tolerance covers bf16 MXU operands (f32 accumulation); reference runs in full f32.
    np.testing.assert_allclose(np.asarray(out), np.asarray(ref), rtol=2e-2, atol=2e-2)

    print("KERNEL_OK")
</pallas_src>

<mosaic_0001>
module attributes {stable_mosaic.version = 11 : i64} {
  func.func @transformer_kernel(%arg0: i32, %arg1: memref<64x32xf32, #tpu.memory_space<vmem>>, %arg2: memref<32x384xbf16, #tpu.memory_space<vmem>>, %arg3: memref<128x32xbf16, #tpu.memory_space<vmem>>, %arg4: memref<1x32xf32, #tpu.memory_space<vmem>>, %arg5: memref<32x128xbf16, #tpu.memory_space<vmem>>, %arg6: memref<1x128xf32, #tpu.memory_space<vmem>>, %arg7: memref<128x32xbf16, #tpu.memory_space<vmem>>, %arg8: memref<1x32xf32, #tpu.memory_space<vmem>>, %arg9: memref<64x32xf32, #tpu.memory_space<vmem>>) attributes {dimension_semantics = [#tpu.dimension_semantics<parallel>], iteration_bounds = array<i64: 2>, scalar_prefetch = 0 : i64, scratch_operands = 0 : i64, tpu.core_type = #tpu.core_type<tc>, window_params = [{transform_indices = @transform_0, window_bounds = array<i64: 64, 32>}, {pipeline_mode = #tpu.pipeline_mode<synchronous>, transform_indices = @transform_1, window_bounds = array<i64: 32, 384>}, {pipeline_mode = #tpu.pipeline_mode<synchronous>, transform_indices = @transform_2, window_bounds = array<i64: 128, 32>}, {pipeline_mode = #tpu.pipeline_mode<synchronous>, transform_indices = @transform_3, window_bounds = array<i64: 1, 32>}, {pipeline_mode = #tpu.pipeline_mode<synchronous>, transform_indices = @transform_4, window_bounds = array<i64: 32, 128>}, {pipeline_mode = #tpu.pipeline_mode<synchronous>, transform_indices = @transform_5, window_bounds = array<i64: 1, 128>}, {pipeline_mode = #tpu.pipeline_mode<synchronous>, transform_indices = @transform_6, window_bounds = array<i64: 128, 32>}, {pipeline_mode = #tpu.pipeline_mode<synchronous>, transform_indices = @transform_7, window_bounds = array<i64: 1, 32>}, {transform_indices = @transform_8, window_bounds = array<i64: 64, 32>}]} {
    %c0 = arith.constant 0 : index
    %c0_0 = arith.constant 0 : index
    %0 = vector.load %arg1[%c0, %c0_0] : memref<64x32xf32, #tpu.memory_space<vmem>>, vector<64x32xf32>
    %cst = arith.constant dense<0.000000e+00> : vector<64xf32>
    %1 = vector.multi_reduction <add>, %0, %cst [1] : vector<64x32xf32> to vector<64xf32>
    %2 = vector.shape_cast %1 : vector<64xf32> to vector<64x1xf32>
    %cst_1 = arith.constant 3.200000e+01 : f32
    %3 = vector.broadcast %cst_1 : f32 to vector<64x1xf32>
    %4 = arith.divf %2, %3 : vector<64x1xf32>
    %5 = vector.broadcast %4 : vector<64x1xf32> to vector<64x32xf32>
    %6 = arith.subf %0, %5 : vector<64x32xf32>
    %7 = arith.mulf %6, %6 : vector<64x32xf32>
    %cst_2 = arith.constant dense<0.000000e+00> : vector<64xf32>
    %8 = vector.multi_reduction <add>, %7, %cst_2 [1] : vector<64x32xf32> to vector<64xf32>
    %9 = vector.shape_cast %8 : vector<64xf32> to vector<64x1xf32>
    %cst_3 = arith.constant 3.200000e+01 : f32
    %10 = vector.broadcast %cst_3 : f32 to vector<64x1xf32>
    %11 = arith.divf %9, %10 : vector<64x1xf32>
    %cst_4 = arith.constant 9.99999974E-6 : f32
    %12 = vector.broadcast %cst_4 : f32 to vector<64x1xf32>
    %13 = arith.addf %11, %12 : vector<64x1xf32>
    %14 = math.rsqrt %13 : vector<64x1xf32>
    %15 = vector.broadcast %14 : vector<64x1xf32> to vector<64x32xf32>
    %16 = arith.mulf %6, %15 : vector<64x32xf32>
    %17 = arith.truncf %16 : vector<64x32xf32> to vector<64x32xbf16>
    %c0_5 = arith.constant 0 : index
    %c0_6 = arith.constant 0 : index
    %18 = vector.load %arg2[%c0_5, %c0_6] : memref<32x384xbf16, #tpu.memory_space<vmem>>, vector<32x384xbf16>
    %cst_7 = arith.constant dense<0.000000e+00> : vector<64x384xf32>
    %19 = tpu.matmul %17, %18, %cst_7 {dimension_numbers = #tpu.dot_dimension_numbers<[1], [0], [0], [1], [0, 0, 1, 1], [], []>} : vector<64x32xbf16>, vector<32x384xbf16>, vector<64x384xf32> -> vector<64x384xf32>
    %20 = vector.extract_strided_slice %19 {offsets = [0, 0], sizes = [64, 32], strides = [1, 1]} : vector<64x384xf32> to vector<64x32xf32>
    %21 = arith.truncf %20 : vector<64x32xf32> to vector<64x32xbf16>
    %22 = vector.extract_strided_slice %19 {offsets = [0, 128], sizes = [64, 32], strides = [1, 1]} : vector<64x384xf32> to vector<64x32xf32>
    %23 = arith.truncf %22 : vector<64x32xf32> to vector<64x32xbf16>
    %24 = vector.extract_strided_slice %19 {offsets = [0, 256], sizes = [64, 32], strides = [1, 1]} : vector<64x384xf32> to vector<64x32xf32>
    %25 = arith.truncf %24 : vector<64x32xf32> to vector<64x32xbf16>
    %cst_8 = arith.constant dense<0.000000e+00> : vector<64x64xf32>
    %26 = tpu.matmul %21, %23, %cst_8 {dimension_numbers = #tpu.dot_dimension_numbers<[1], [1], [0], [0], [0, 0, 1, 0], [], []>} : vector<64x32xbf16>, vector<64x32xbf16>, vector<64x64xf32> -> vector<64x64xf32>
    %cst_9 = arith.constant dense<0xFF800000> : vector<64xf32>
    %27 = vector.multi_reduction <maximumf>, %26, %cst_9 [1] : vector<64x64xf32> to vector<64xf32>
    %28 = vector.shape_cast %27 : vector<64xf32> to vector<64x1xf32>
    %29 = vector.broadcast %28 : vector<64x1xf32> to vector<64x64xf32>
    %30 = arith.subf %26, %29 : vector<64x64xf32>
    %31 = math.exp %30 : vector<64x64xf32>
    %cst_10 = arith.constant dense<0.000000e+00> : vector<64xf32>
    %32 = vector.multi_reduction <add>, %31, %cst_10 [1] : vector<64x64xf32> to vector<64xf32>
    %33 = vector.shape_cast %32 : vector<64xf32> to vector<64x1xf32>
    %cst_11 = arith.constant 1.000000e+00 : f32
    %34 = vector.broadcast %cst_11 : f32 to vector<64x1xf32>
    %35 = arith.divf %34, %33 : vector<64x1xf32>
    %36 = vector.broadcast %35 : vector<64x1xf32> to vector<64x64xf32>
    %37 = arith.mulf %31, %36 : vector<64x64xf32>
    %38 = arith.truncf %37 : vector<64x64xf32> to vector<64x64xbf16>
    %cst_12 = arith.constant dense<0.000000e+00> : vector<64x32xf32>
    %39 = tpu.matmul %38, %25, %cst_12 {dimension_numbers = #tpu.dot_dimension_numbers<[1], [0], [0], [1], [0, 0, 1, 1], [], []>} : vector<64x64xbf16>, vector<64x32xbf16>, vector<64x32xf32> -> vector<64x32xf32>
    %40 = arith.truncf %39 : vector<64x32xf32> to vector<64x32xbf16>
    %c0_13 = arith.constant 0 : index
    %c0_14 = arith.constant 0 : index
    %41 = vector.load %arg3[%c0_13, %c0_14] : memref<128x32xbf16, #tpu.memory_space<vmem>>, vector<32x32xbf16>
    %cst_15 = arith.constant dense<0.000000e+00> : vector<64x32xf32>
    %42 = tpu.matmul %40, %41, %cst_15 {dimension_numbers = #tpu.dot_dimension_numbers<[1], [0], [0], [1], [0, 0, 1, 1], [], []>} : vector<64x32xbf16>, vector<32x32xbf16>, vector<64x32xf32> -> vector<64x32xf32>
    %43 = vector.extract_strided_slice %19 {offsets = [0, 32], sizes = [64, 32], strides = [1, 1]} : vector<64x384xf32> to vector<64x32xf32>
    %44 = arith.truncf %43 : vector<64x32xf32> to vector<64x32xbf16>
    %45 = vector.extract_strided_slice %19 {offsets = [0, 160], sizes = [64, 32], strides = [1, 1]} : vector<64x384xf32> to vector<64x32xf32>
    %46 = arith.truncf %45 : vector<64x32xf32> to vector<64x32xbf16>
    %47 = vector.extract_strided_slice %19 {offsets = [0, 288], sizes = [64, 32], strides = [1, 1]} : vector<64x384xf32> to vector<64x32xf32>
    %48 = arith.truncf %47 : vector<64x32xf32> to vector<64x32xbf16>
    %cst_16 = arith.constant dense<0.000000e+00> : vector<64x64xf32>
    %49 = tpu.matmul %44, %46, %cst_16 {dimension_numbers = #tpu.dot_dimension_numbers<[1], [1], [0], [0], [0, 0, 1, 0], [], []>} : vector<64x32xbf16>, vector<64x32xbf16>, vector<64x64xf32> -> vector<64x64xf32>
    %cst_17 = arith.constant dense<0xFF800000> : vector<64xf32>
    %50 = vector.multi_reduction <maximumf>, %49, %cst_17 [1] : vector<64x64xf32> to vector<64xf32>
    %51 = vector.shape_cast %50 : vector<64xf32> to vector<64x1xf32>
    %52 = vector.broadcast %51 : vector<64x1xf32> to vector<64x64xf32>
    %53 = arith.subf %49, %52 : vector<64x64xf32>
    %54 = math.exp %53 : vector<64x64xf32>
    %cst_18 = arith.constant dense<0.000000e+00> : vector<64xf32>
    %55 = vector.multi_reduction <add>, %54, %cst_18 [1] : vector<64x64xf32> to vector<64xf32>
    %56 = vector.shape_cast %55 : vector<64xf32> to vector<64x1xf32>
    %cst_19 = arith.constant 1.000000e+00 : f32
    %57 = vector.broadcast %cst_19 : f32 to vector<64x1xf32>
    %58 = arith.divf %57, %56 : vector<64x1xf32>
    %59 = vector.broadcast %58 : vector<64x1xf32> to vector<64x64xf32>
    %60 = arith.mulf %54, %59 : vector<64x64xf32>
    %61 = arith.truncf %60 : vector<64x64xf32> to vector<64x64xbf16>
    %cst_20 = arith.constant dense<0.000000e+00> : vector<64x32xf32>
    %62 = tpu.matmul %61, %48, %cst_20 {dimension_numbers = #tpu.dot_dimension_numbers<[1], [0], [0], [1], [0, 0, 1, 1], [], []>} : vector<64x64xbf16>, vector<64x32xbf16>, vector<64x32xf32> -> vector<64x32xf32>
    %63 = arith.truncf %62 : vector<64x32xf32> to vector<64x32xbf16>
    %c32 = arith.constant 32 : index
    %c0_21 = arith.constant 0 : index
    %64 = vector.load %arg3[%c32, %c0_21] : memref<128x32xbf16, #tpu.memory_space<vmem>>, vector<32x32xbf16>
    %cst_22 = arith.constant dense<0.000000e+00> : vector<64x32xf32>
    %65 = tpu.matmul %63, %64, %cst_22 {dimension_numbers = #tpu.dot_dimension_numbers<[1], [0], [0], [1], [0, 0, 1, 1], [], []>} : vector<64x32xbf16>, vector<32x32xbf16>, vector<64x32xf32> -> vector<64x32xf32>
    %66 = arith.addf %42, %65 : vector<64x32xf32>
    %67 = vector.extract_strided_slice %19 {offsets = [0, 64], sizes = [64, 32], strides = [1, 1]} : vector<64x384xf32> to vector<64x32xf32>
    %68 = arith.truncf %67 : vector<64x32xf32> to vector<64x32xbf16>
    %69 = vector.extract_strided_slice %19 {offsets = [0, 192], sizes = [64, 32], strides = [1, 1]} : vector<64x384xf32> to vector<64x32xf32>
    %70 = arith.truncf %69 : vector<64x32xf32> to vector<64x32xbf16>
    %71 = vector.extract_strided_slice %19 {offsets = [0, 320], sizes = [64, 32], strides = [1, 1]} : vector<64x384xf32> to vector<64x32xf32>
    %72 = arith.truncf %71 : vector<64x32xf32> to vector<64x32xbf16>
    %cst_23 = arith.constant dense<0.000000e+00> : vector<64x64xf32>
    %73 = tpu.matmul %68, %70, %cst_23 {dimension_numbers = #tpu.dot_dimension_numbers<[1], [1], [0], [0], [0, 0, 1, 0], [], []>} : vector<64x32xbf16>, vector<64x32xbf16>, vector<64x64xf32> -> vector<64x64xf32>
    %cst_24 = arith.constant dense<0xFF800000> : vector<64xf32>
    %74 = vector.multi_reduction <maximumf>, %73, %cst_24 [1] : vector<64x64xf32> to vector<64xf32>
    %75 = vector.shape_cast %74 : vector<64xf32> to vector<64x1xf32>
    %76 = vector.broadcast %75 : vector<64x1xf32> to vector<64x64xf32>
    %77 = arith.subf %73, %76 : vector<64x64xf32>
    %78 = math.exp %77 : vector<64x64xf32>
    %cst_25 = arith.constant dense<0.000000e+00> : vector<64xf32>
    %79 = vector.multi_reduction <add>, %78, %cst_25 [1] : vector<64x64xf32> to vector<64xf32>
    %80 = vector.shape_cast %79 : vector<64xf32> to vector<64x1xf32>
    %cst_26 = arith.constant 1.000000e+00 : f32
    %81 = vector.broadcast %cst_26 : f32 to vector<64x1xf32>
    %82 = arith.divf %81, %80 : vector<64x1xf32>
    %83 = vector.broadcast %82 : vector<64x1xf32> to vector<64x64xf32>
    %84 = arith.mulf %78, %83 : vector<64x64xf32>
    %85 = arith.truncf %84 : vector<64x64xf32> to vector<64x64xbf16>
    %cst_27 = arith.constant dense<0.000000e+00> : vector<64x32xf32>
    %86 = tpu.matmul %85, %72, %cst_27 {dimension_numbers = #tpu.dot_dimension_numbers<[1], [0], [0], [1], [0, 0, 1, 1], [], []>} : vector<64x64xbf16>, vector<64x32xbf16>, vector<64x32xf32> -> vector<64x32xf32>
    %87 = arith.truncf %86 : vector<64x32xf32> to vector<64x32xbf16>
    %c64 = arith.constant 64 : index
    %c0_28 = arith.constant 0 : index
    %88 = vector.load %arg3[%c64, %c0_28] : memref<128x32xbf16, #tpu.memory_space<vmem>>, vector<32x32xbf16>
    %cst_29 = arith.constant dense<0.000000e+00> : vector<64x32xf32>
    %89 = tpu.matmul %87, %88, %cst_29 {dimension_numbers = #tpu.dot_dimension_numbers<[1], [0], [0], [1], [0, 0, 1, 1], [], []>} : vector<64x32xbf16>, vector<32x32xbf16>, vector<64x32xf32> -> vector<64x32xf32>
    %90 = arith.addf %66, %89 : vector<64x32xf32>
    %91 = vector.extract_strided_slice %19 {offsets = [0, 96], sizes = [64, 32], strides = [1, 1]} : vector<64x384xf32> to vector<64x32xf32>
    %92 = arith.truncf %91 : vector<64x32xf32> to vector<64x32xbf16>
    %93 = vector.extract_strided_slice %19 {offsets = [0, 224], sizes = [64, 32], strides = [1, 1]} : vector<64x384xf32> to vector<64x32xf32>
    %94 = arith.truncf %93 : vector<64x32xf32> to vector<64x32xbf16>
    %95 = vector.extract_strided_slice %19 {offsets = [0, 352], sizes = [64, 32], strides = [1, 1]} : vector<64x384xf32> to vector<64x32xf32>
    %96 = arith.truncf %95 : vector<64x32xf32> to vector<64x32xbf16>
    %cst_30 = arith.constant dense<0.000000e+00> : vector<64x64xf32>
    %97 = tpu.matmul %92, %94, %cst_30 {dimension_numbers = #tpu.dot_dimension_numbers<[1], [1], [0], [0], [0, 0, 1, 0], [], []>} : vector<64x32xbf16>, vector<64x32xbf16>, vector<64x64xf32> -> vector<64x64xf32>
    %cst_31 = arith.constant dense<0xFF800000> : vector<64xf32>
    %98 = vector.multi_reduction <maximumf>, %97, %cst_31 [1] : vector<64x64xf32> to vector<64xf32>
    %99 = vector.shape_cast %98 : vector<64xf32> to vector<64x1xf32>
    %100 = vector.broadcast %99 : vector<64x1xf32> to vector<64x64xf32>
    %101 = arith.subf %97, %100 : vector<64x64xf32>
    %102 = math.exp %101 : vector<64x64xf32>
    %cst_32 = arith.constant dense<0.000000e+00> : vector<64xf32>
    %103 = vector.multi_reduction <add>, %102, %cst_32 [1] : vector<64x64xf32> to vector<64xf32>
    %104 = vector.shape_cast %103 : vector<64xf32> to vector<64x1xf32>
    %cst_33 = arith.constant 1.000000e+00 : f32
    %105 = vector.broadcast %cst_33 : f32 to vector<64x1xf32>
    %106 = arith.divf %105, %104 : vector<64x1xf32>
    %107 = vector.broadcast %106 : vector<64x1xf32> to vector<64x64xf32>
    %108 = arith.mulf %102, %107 : vector<64x64xf32>
    %109 = arith.truncf %108 : vector<64x64xf32> to vector<64x64xbf16>
    %cst_34 = arith.constant dense<0.000000e+00> : vector<64x32xf32>
    %110 = tpu.matmul %109, %96, %cst_34 {dimension_numbers = #tpu.dot_dimension_numbers<[1], [0], [0], [1], [0, 0, 1, 1], [], []>} : vector<64x64xbf16>, vector<64x32xbf16>, vector<64x32xf32> -> vector<64x32xf32>
    %111 = arith.truncf %110 : vector<64x32xf32> to vector<64x32xbf16>
    %c96 = arith.constant 96 : index
    %c0_35 = arith.constant 0 : index
    %112 = vector.load %arg3[%c96, %c0_35] : memref<128x32xbf16, #tpu.memory_space<vmem>>, vector<32x32xbf16>
    %cst_36 = arith.constant dense<0.000000e+00> : vector<64x32xf32>
    %113 = tpu.matmul %111, %112, %cst_36 {dimension_numbers = #tpu.dot_dimension_numbers<[1], [0], [0], [1], [0, 0, 1, 1], [], []>} : vector<64x32xbf16>, vector<32x32xbf16>, vector<64x32xf32> -> vector<64x32xf32>
    %114 = arith.addf %90, %113 : vector<64x32xf32>
    %115 = arith.addf %0, %114 : vector<64x32xf32>
    %c0_37 = arith.constant 0 : index
    %c0_38 = arith.constant 0 : index
    %116 = vector.load %arg4[%c0_37, %c0_38] : memref<1x32xf32, #tpu.memory_space<vmem>>, vector<1x32xf32>
    %117 = vector.broadcast %116 : vector<1x32xf32> to vector<64x32xf32>
    %118 = arith.addf %115, %117 : vector<64x32xf32>
    %cst_39 = arith.constant dense<0.000000e+00> : vector<64xf32>
    %119 = vector.multi_reduction <add>, %118, %cst_39 [1] : vector<64x32xf32> to vector<64xf32>
    %120 = vector.shape_cast %119 : vector<64xf32> to vector<64x1xf32>
    %cst_40 = arith.constant 3.200000e+01 : f32
    %121 = vector.broadcast %cst_40 : f32 to vector<64x1xf32>
    %122 = arith.divf %120, %121 : vector<64x1xf32>
    %123 = vector.broadcast %122 : vector<64x1xf32> to vector<64x32xf32>
    %124 = arith.subf %118, %123 : vector<64x32xf32>
    %125 = arith.mulf %124, %124 : vector<64x32xf32>
    %cst_41 = arith.constant dense<0.000000e+00> : vector<64xf32>
    %126 = vector.multi_reduction <add>, %125, %cst_41 [1] : vector<64x32xf32> to vector<64xf32>
    %127 = vector.shape_cast %126 : vector<64xf32> to vector<64x1xf32>
    %cst_42 = arith.constant 3.200000e+01 : f32
    %128 = vector.broadcast %cst_42 : f32 to vector<64x1xf32>
    %129 = arith.divf %127, %128 : vector<64x1xf32>
    %cst_43 = arith.constant 9.99999974E-6 : f32
    %130 = vector.broadcast %cst_43 : f32 to vector<64x1xf32>
    %131 = arith.addf %129, %130 : vector<64x1xf32>
    %132 = math.rsqrt %131 : vector<64x1xf32>
    %133 = vector.broadcast %132 : vector<64x1xf32> to vector<64x32xf32>
    %134 = arith.mulf %124, %133 : vector<64x32xf32>
    %135 = arith.truncf %134 : vector<64x32xf32> to vector<64x32xbf16>
    %c0_44 = arith.constant 0 : index
    %c0_45 = arith.constant 0 : index
    %136 = vector.load %arg5[%c0_44, %c0_45] : memref<32x128xbf16, #tpu.memory_space<vmem>>, vector<32x128xbf16>
    %cst_46 = arith.constant dense<0.000000e+00> : vector<64x128xf32>
    %137 = tpu.matmul %135, %136, %cst_46 {dimension_numbers = #tpu.dot_dimension_numbers<[1], [0], [0], [1], [0, 0, 1, 1], [], []>} : vector<64x32xbf16>, vector<32x128xbf16>, vector<64x128xf32> -> vector<64x128xf32>
    %c0_47 = arith.constant 0 : index
    %c0_48 = arith.constant 0 : index
    %138 = vector.load %arg6[%c0_47, %c0_48] : memref<1x128xf32, #tpu.memory_space<vmem>>, vector<1x128xf32>
    %139 = vector.broadcast %138 : vector<1x128xf32> to vector<64x128xf32>
    %140 = arith.addf %137, %139 : vector<64x128xf32>
    %cst_49 = arith.constant 5.000000e-01 : f32
    %141 = vector.broadcast %cst_49 : f32 to vector<64x128xf32>
    %142 = arith.mulf %141, %140 : vector<64x128xf32>
    %cst_50 = arith.constant 1.41421354 : f32
    %143 = vector.broadcast %cst_50 : f32 to vector<64x128xf32>
    %144 = arith.divf %140, %143 : vector<64x128xf32>
    %145 = math.erf %144 : vector<64x128xf32>
    %cst_51 = arith.constant 1.000000e+00 : f32
    %146 = vector.broadcast %cst_51 : f32 to vector<64x128xf32>
    %147 = arith.addf %146, %145 : vector<64x128xf32>
    %148 = arith.mulf %142, %147 : vector<64x128xf32>
    %149 = arith.truncf %148 : vector<64x128xf32> to vector<64x128xbf16>
    %c0_52 = arith.constant 0 : index
    %c0_53 = arith.constant 0 : index
    %150 = vector.load %arg7[%c0_52, %c0_53] : memref<128x32xbf16, #tpu.memory_space<vmem>>, vector<128x32xbf16>
    %cst_54 = arith.constant dense<0.000000e+00> : vector<64x32xf32>
    %151 = tpu.matmul %149, %150, %cst_54 {dimension_numbers = #tpu.dot_dimension_numbers<[1], [0], [0], [1], [0, 0, 1, 1], [], []>} : vector<64x128xbf16>, vector<128x32xbf16>, vector<64x32xf32> -> vector<64x32xf32>
    %c0_55 = arith.constant 0 : index
    %c0_56 = arith.constant 0 : index
    %152 = vector.load %arg8[%c0_55, %c0_56] : memref<1x32xf32, #tpu.memory_space<vmem>>, vector<1x32xf32>
    %153 = vector.broadcast %152 : vector<1x32xf32> to vector<64x32xf32>
    %154 = arith.addf %151, %153 : vector<64x32xf32>
    %155 = arith.addf %118, %154 : vector<64x32xf32>
    %c0_57 = arith.constant 0 : index
    %c0_58 = arith.constant 0 : index
    %156 = vector.load %arg9[%c0_57, %c0_58] : memref<64x32xf32, #tpu.memory_space<vmem>>, vector<64x32xf32>
    tpu.vector_store %arg9[%c0_57, %c0_58], %155 {strides = array<i32>} : memref<64x32xf32, #tpu.memory_space<vmem>>, vector<64x32xf32>,
    return
  }
  func.func @transform_0(%arg0: i32) -> (i32, i32) {
    %c0_i32 = arith.constant 0 : i32
    %c0_i32_0 = arith.constant 0 : i32
    return %arg0, %c0_i32 : i32, i32
  }
  func.func @transform_1(%arg0: i32) -> (i32, i32) {
    %c0_i32 = arith.constant 0 : i32
    %c0_i32_0 = arith.constant 0 : i32
    %c0_i32_1 = arith.constant 0 : i32
    return %c0_i32, %c0_i32_0 : i32, i32
  }
  func.func @transform_2(%arg0: i32) -> (i32, i32) {
    %c0_i32 = arith.constant 0 : i32
    %c0_i32_0 = arith.constant 0 : i32
    %c0_i32_1 = arith.constant 0 : i32
    return %c0_i32, %c0_i32_0 : i32, i32
  }
  func.func @transform_3(%arg0: i32) -> (i32, i32) {
    %c0_i32 = arith.constant 0 : i32
    %c0_i32_0 = arith.constant 0 : i32
    %c0_i32_1 = arith.constant 0 : i32
    return %c0_i32, %c0_i32_0 : i32, i32
  }
  func.func @transform_4(%arg0: i32) -> (i32, i32) {
    %c0_i32 = arith.constant 0 : i32
    %c0_i32_0 = arith.constant 0 : i32
    %c0_i32_1 = arith.constant 0 : i32
    return %c0_i32, %c0_i32_0 : i32, i32
  }
  func.func @transform_5(%arg0: i32) -> (i32, i32) {
    %c0_i32 = arith.constant 0 : i32
    %c0_i32_0 = arith.constant 0 : i32
    %c0_i32_1 = arith.constant 0 : i32
    return %c0_i32, %c0_i32_0 : i32, i32
  }
  func.func @transform_6(%arg0: i32) -> (i32, i32) {
    %c0_i32 = arith.constant 0 : i32
    %c0_i32_0 = arith.constant 0 : i32
    %c0_i32_1 = arith.constant 0 : i32
    return %c0_i32, %c0_i32_0 : i32, i32
  }
  func.func @transform_7(%arg0: i32) -> (i32, i32) {
    %c0_i32 = arith.constant 0 : i32
    %c0_i32_0 = arith.constant 0 : i32
    %c0_i32_1 = arith.constant 0 : i32
    return %c0_i32, %c0_i32_0 : i32, i32
  }
  func.func @transform_8(%arg0: i32) -> (i32, i32) {
    %c0_i32 = arith.constant 0 : i32
    %c0_i32_0 = arith.constant 0 : i32
    return %arg0, %c0_i32 : i32, i32
  }
}

</mosaic_0001>

<bundles_post_ra>
// kernel: tpu_custom_call.1
= control target key start
LH: loop header
LB: loop body
LE: loop exit
PB: predicated region body
PF: predicated region fallthrough
CT: control target
= control target key end

     0   :  { %s3432_s27 = smov 0   ;;  %s4224_s0 = inlined_call_operand.vmem [shape: f32[128,32], index: 0, kind: input, shape index: {}]   ;;  %s4225_s1 = inlined_call_operand.vmem [shape: bf16[32,384], index: 1, kind: input, shape index: {}]   ;;  %s4226_s2 = inlined_call_operand.vmem [shape: bf16[128,32], index: 2, kind: input, shape index: {}]   ;;  %s4227_s3 = inlined_call_operand.vmem [shape: f32[1,32], index: 3, kind: input, shape index: {}]   ;;  %s4228_s4 = inlined_call_operand.vmem [shape: bf16[32,128], index: 4, kind: input, shape index: {}]   ;;  %s4229_s5 = inlined_call_operand.vmem [shape: f32[1,128], index: 5, kind: input, shape index: {}]   ;;  %s4230_s6 = inlined_call_operand.vmem [shape: bf16[128,32], index: 6, kind: input, shape index: {}]   ;;  %s4231_s7 = inlined_call_operand.vmem [shape: f32[1,32], index: 7, kind: input, shape index: {}]   ;;  %s4232_s8 = inlined_call_operand.vmem [shape: f32[128,32], index: 8, kind: output, shape index: {}]  }
   0x1 LB: > { %s2679_s28 = sadd.s32 4294967295, %s3381_s27   ;;  %p2683_p0 = scmp.ge.s32.totalorder %s3381_s27, 1  ;;  %s3381_s27 = sphi %s3432_s27, %s18_s27  }
   0x2   : > { %p263_p1 = scmp.lt.s32.totalorder %s3381_s27, 3 }
   0x4   : > { %p264_p2 = pnand %p2683_p0, %p263_p1 }
   0x5   : > { %s2684_s29 = sshll.u32 (!%p264_p2), %s2679_s28, 3  ;;  %vm318_vm0 = vcmask (!%p264_p2), 261120   ;;  %v3165_v56 = vld [vmem:[%s4225_s1 + $0x4] ss:$12 sps:$4 sm:$0xff] (!%p264_p2)   ;;  %v3167_v57 = vld [vmem:[%s4225_s1] ss:$12 sps:$4 sm:$0xff] (!%p264_p2)  }
   0x6   : > { %267 = sbr.rel (%p264_p2) target bundleno = 3624 (0xe28), region = 52  ;;  %p298_p3 = scmp.lt.s32.totalorder (!%p264_p2), %s2684_s29, 15  ;;  %480 = vmatprep.subr.bf16.mxu0 (!%p264_p2), %v3165_v56  ;;  %v3168_v58 = vld [vmem:[%s4225_s1 + $0x1c] ss:$12 sps:$4 sm:$0xff] (!%p264_p2)   ;;  %v3171_v60 = vld [vmem:[%s4225_s1 + $0x18] ss:$12 sps:$4 sm:$0xff] (!%p264_p2)  }
   0x7   : > { %481 = vmatpush1.bf16.msra.mxu0 (!%p264_p2), %v3167_v57  ;;  %v3170_v59 = vld [vmem:[%s4225_s1 + $0x8] ss:$12 sps:$4 sm:$0xff] (!%p264_p2)   ;;  %v3383_v61 = vmov (!%p264_p2), 0   ;;  %v3172_v62 = vld [vmem:[%s4225_s1 + $0x20] ss:$12 sps:$4 sm:$0xff] (!%p264_p2)   ;;  %vm719_vm1 = vcmask (!%p264_p2), 523264  }
   0x8   : > { %482 = vmatprep.subr.bf16.mxu0 (!%p264_p2), %v3168_v58  ;;  %2889 = vmatprep.subr.bf16.mxu1 (!%p264_p2), %v3170_v59  ;;  %s3384_s24 = smov (!%p264_p2), 96   ;;  %s3385_s25 = smov (!%p264_p2), 64  }
   0x9   : > { %2890 = vmatpush3.bf16.msra.mxu1 (!%p264_p2), %v3170_v59  ;;  %512 = vmatprep.mubr.bf16.mxu0 (!%p264_p2), %v3383_v61  ;;  %s3386_s26 = smov (!%p264_p2), 32  }
   0xa   : > { %2891 = vmatprep.subr.bf16.mxu1 (!%p264_p2), %v3172_v62 }
   0xb   : > { %483 = vmatpush1.bf16.msra.mxu0 (!%p264_p2), %v3171_v60 }
   0xd   : > { %s4234_s29 = smov (!%p298_p3, %s2684_s29), 15  ;;  %2892 = vmatpush3.bf16.msra.mxu1 %v3172_v62 }
   0xe   : > { %s2685_s30 = sshll.u32 %s4234_s29, 3 }
   0xf   : > { %s3448_s11 = scalar_lea.vmem %s4224_s0, %s2685_s30  ;;  %s307_s15 = scalar_lea.vmem %s4232_s8, %s2685_s30 }
  0x10   : > { %v310_v0 = vld [vmem:[%s3448_s11] sm:$0xff]  ;;  %v312_v1 = vld [vmem:[%s3448_s11 + $0x10] sm:$0xff]  ;;  %v311_v2 = vld [vmem:[%s3448_s11 + $0x8] sm:$0xff] }
  0x11   : > { %v319_v3 = vsel %vm318_vm0, %v310_v0, 0.0  ;;  %v325_v4 = vsel %vm318_vm0, %v312_v1, 0.0  ;;  %v313_v5 = vld [vmem:[%s3448_s11 + $0x18] sm:$0xff]  ;;  %v314_v6 = vld [vmem:[%s3448_s11 + $0x20] sm:$0xff]  ;;  %v315_v7 = vld [vmem:[%s3448_s11 + $0x28] sm:$0xff]  ;;  %v322_v8 = vsel %vm318_vm0, %v311_v2, 0.0 }
  0x12   : > { %320 = vadd.xlane.f32.xlu0 %v319_v3  ;;  %326 = vadd.xlane.f32.xlu1 %v325_v4  ;;  %v328_v9 = vsel %vm318_vm0, %v313_v5, 0.0  ;;  %v331_v10 = vsel %vm318_vm0, %v314_v6, 0.0  ;;  %v334_v11 = vsel %vm318_vm0, %v315_v7, 0.0  ;;  %v316_v12 = vld [vmem:[%s3448_s11 + $0x30] sm:$0xff]  ;;  %v317_v13 = vld [vmem:[%s3448_s11 + $0x38] sm:$0xff] }
  0x13   : > { %v337_v14 = vsel %vm318_vm0, %v316_v12, 0.0  ;;  %v340_v15 = vsel %vm318_vm0, %v317_v13, 0.0 }
  0x16   : > { %323 = vadd.xlane.f32.xlu0 %v322_v8  ;;  %329 = vadd.xlane.f32.xlu1 %v328_v9 }
  0x1a   : > { %332 = vadd.xlane.f32.xlu0 %v331_v10  ;;  %335 = vadd.xlane.f32.xlu1 %v334_v11 }
  0x1e   : > { %338 = vadd.xlane.f32.xlu0 %v337_v14  ;;  %341 = vadd.xlane.f32.xlu1 %v340_v15 }
  0x9f   : > { %v321_v16 = vpop.xlane.xlu0 %320  ;;  %v327_v17 = vpop.xlane.xlu1 %326 }
  0xa0   : > { %v344_v18 = vmul.f32 0.03125, %v321_v16  ;;  %v346_v19 = vmul.f32 0.03125, %v327_v17 }
  0xa2   : > { %v3466_v20 = vsub.f32 %v310_v0, %v344_v18  ;;  %v3468_v21 = vsub.f32 %v312_v1, %v346_v19 }
  0xa3   : > { %v324_v22 = vpop.xlane.xlu0 %323  ;;  %v330_v23 = vpop.xlane.xlu1 %329 }
  0xa4   : > { %v345_v24 = vmul.f32 0.03125, %v324_v22  ;;  %v347_v25 = vmul.f32 0.03125, %v330_v23  ;;  %v360_v26 = vmul.f32 %v3466_v20, %v3466_v20  ;;  %v362_v27 = vmul.f32 %v3468_v21, %v3468_v21 }
  0xa6   : > { %v3474_v28 = vsub.f32 %v311_v2, %v345_v24  ;;  %v3476_v29 = vsub.f32 %v313_v5, %v347_v25  ;;  %v368_v30 = vsel %vm318_vm0, %v360_v26, 0.0  ;;  %v374_v33 = vsel %vm318_vm0, %v362_v27, 0.0 }
  0xa7   : > { %369 = vadd.xlane.f32.xlu0 %v368_v30  ;;  %v333_v31 = vpop.xlane.xlu0 %332  ;;  %v336_v32 = vpop.xlane.xlu1 %335 }
  0xa8   : > { %v348_v34 = vmul.f32 0.03125, %v333_v31  ;;  %v349_v35 = vmul.f32 0.03125, %v336_v32  ;;  %v361_v36 = vmul.f32 %v3474_v28, %v3474_v28  ;;  %v363_v37 = vmul.f32 %v3476_v29, %v3476_v29 }
  0xaa   : > { %v3484_v38 = vsub.f32 %v314_v6, %v348_v34  ;;  %v3486_v39 = vsub.f32 %v315_v7, %v349_v35  ;;  %v371_v40 = vsel %vm318_vm0, %v361_v36, 0.0  ;;  %v377_v43 = vsel %vm318_vm0, %v363_v37, 0.0 }
  0xab   : > { %375 = vadd.xlane.f32.xlu0 %v374_v33  ;;  %372 = vadd.xlane.f32.xlu1 %v371_v40  ;;  %v339_v41 = vpop.xlane.xlu0 %338  ;;  %v342_v42 = vpop.xlane.xlu1 %341 }
  0xac   : > { %v350_v44 = vmul.f32 0.03125, %v339_v41  ;;  %v351_v45 = vmul.f32 0.03125, %v342_v42  ;;  %v364_v46 = vmul.f32 %v3484_v38, %v3484_v38  ;;  %v365_v47 = vmul.f32 %v3486_v39, %v3486_v39 }
  0xae   : > { %v3494_v48 = vsub.f32 %v316_v12, %v350_v44  ;;  %v3496_v49 = vsub.f32 %v317_v13, %v351_v45  ;;  %v380_v50 = vsel %vm318_vm0, %v364_v46, 0.0  ;;  %v383_v51 = vsel %vm318_vm0, %v365_v47, 0.0 }
  0xaf   : > { %378 = vadd.xlane.f32.xlu1 %v377_v43  ;;  %381 = vadd.xlane.f32.xlu0 %v380_v50 }
  0xb0   : > { %v366_v52 = vmul.f32 %v3494_v48, %v3494_v48  ;;  %v367_v53 = vmul.f32 %v3496_v49, %v3496_v49 }
  0xb2   : > { %v386_v54 = vsel %vm318_vm0, %v366_v52, 0.0  ;;  %v389_v55 = vsel %vm318_vm0, %v367_v53, 0.0 }
  0xb3   : > { %384 = vadd.xlane.f32.xlu1 %v383_v51  ;;  %387 = vadd.xlane.f32.xlu0 %v386_v54 }
  0xb7   : > { %390 = vadd.xlane.f32.xlu1 %v389_v55 }
 0x134   : > { %v370_v63 = vpop.xlane.xlu0 %369 }
 0x135   : > { %v392_v0 = vmul.f32 0.03125, %v370_v63 }
 0x137   : > { %v400_v1 = vadd.f32 1e-05, %v392_v0 }
 0x138   : > { %v373_v2 = vpop.xlane.xlu1 %372  ;;  %v376_v3 = vpop.xlane.xlu0 %375 }
 0x139   : > { %v393_v4 = vmul.f32 0.03125, %v373_v2  ;;  %v394_v5 = vmul.f32 0.03125, %v376_v3  ;;  %3191 = vrsqrt.f32 %v400_v1 }
 0x13b   : > { %v401_v6 = vadd.f32 1e-05, %v393_v4  ;;  %v402_v7 = vadd.f32 1e-05, %v394_v5 }
 0x13c   : > { %v379_v8 = vpop.xlane.xlu1 %378  ;;  %v382_v9 = vpop.xlane.xlu0 %381 }
 0x13d   : > { %3193 = vrsqrt.f32 %v401_v6  ;;  %v395_v10 = vmul.f32 0.03125, %v379_v8  ;;  %v396_v11 = vmul.f32 0.03125, %v382_v9 }
 0x13e   : > { %3195 = vrsqrt.f32 %v402_v7 }
 0x13f   : > { %v403_v12 = vadd.f32 1e-05, %v395_v10  ;;  %v404_v13 = vadd.f32 1e-05, %v396_v11 }
 0x140   : > { %v385_v14 = vpop.xlane.xlu1 %384  ;;  %v388_v15 = vpop.xlane.xlu0 %387 }
 0x141   : > { %3197 = vrsqrt.f32 %v403_v12  ;;  %v397_v16 = vmul.f32 0.03125, %v385_v14  ;;  %v398_v17 = vmul.f32 0.03125, %v388_v15 }
 0x142   : > { %3199 = vrsqrt.f32 %v404_v13 }
 0x143   : > { %v405_v18 = vadd.f32 1e-05, %v397_v16  ;;  %v406_v19 = vadd.f32 1e-05, %v398_v17  ;;  %v3192_v23 = vpop.eup %3191 }
 0x144   : > { %v391_v22 = vpop.xlane.xlu1 %390  ;;  %v416_v27 = vmul.f32 %v3192_v23, %v3466_v20 }
 0x145   : > { %3201 = vrsqrt.f32 %v405_v18  ;;  %v399_v24 = vmul.f32 0.03125, %v391_v22 }
 0x146   : > { %3203 = vrsqrt.f32 %v406_v19 }
 0x147   : > { %v3194_v25 = vpop.eup %3193  ;;  %v407_v26 = vadd.f32 1e-05, %v399_v24 }
 0x148   : > { %v417_v30 = vmul.f32 %v3194_v25, %v3474_v28  ;;  %v3196_v31 = vpop.eup %3195 }
 0x149   : > { %3205 = vrsqrt.f32 %v407_v26  ;;  %v418_v34 = vmul.f32 %v3196_v31, %v3468_v21 }
 0x14a   : > { %v424_v32 = vpack.c.bf16 %v417_v30, %v416_v27 }
 0x14b   : > { %v3198_v33 = vpop.eup %3197 }
 0x14c   : > { %2694 = vmatmul.mubr.msk.bf16.vlgmr.msra.gmra.mrb[0].mxu0 %vm318_vm0, %v424_v32  ;;  %2893 = vmatprep.mubr.msk.bf16.mxu1 %vm318_vm0, %v424_v32  ;;  %v419_v35 = vmul.f32 %v3198_v33, %v3476_v29  ;;  %v3200_v36 = vpop.eup %3199 }
 0x14d   : > { %522 = vmatprep.mubr.bf16.mxu0 %v3383_v61  ;;  %v420_v20 = vmul.f32 %v3200_v36, %v3484_v38 }
 0x14e   : > { %v425_v37 = vpack.c.bf16 %v419_v35, %v418_v34 }
 0x14f   : > { %v3202_v40 = vpop.eup %3201 }
 0x150   : > { %2894 = vmatmul.mubr.msk.bf16.vlgmr.msra.gmra.mrb[0].mxu1 %vm318_vm0, %v425_v37  ;;  %v421_v28 = vmul.f32 %v3202_v40, %v3486_v39  ;;  %v3204_v41 = vpop.eup %3203 }
 0x151   : > { %v422_v21 = vmul.f32 %v3204_v41, %v3494_v48 }
 0x152   : > { %v426_v42 = vpack.c.bf16 %v421_v28, %v420_v20 }
 0x153   : > { %v3206_v43 = vpop.eup %3205 }
 0x154   : > { %2695 = vmatmul.mubr.msk.bf16.gmra.mrb[4].mxu0 %vm318_vm0, %v425_v37  ;;  %2897 = vmatprep.mubr.msk.bf16.mxu1 %vm318_vm0, %v426_v42  ;;  %v423_v29 = vmul.f32 %v3206_v43, %v3496_v49 }
 0x155   : > { %532 = vmatprep.mubr.bf16.mxu0 %v3383_v61 }
 0x156   : > { %v427_v44 = vpack.c.bf16 %v423_v29, %v422_v21 }
 0x158   : > { %2898 = vmatmul.mubr.msk.bf16.gmra.mrb[4].mxu1 %vm318_vm0, %v427_v44 }
 0x15c   : > { %2696 = vmatmul.mubr.msk.bf16.gmra.mrb[8].mxu0 %vm318_vm0, %v426_v42 }
 0x15d   : > { %542 = vmatprep.mubr.bf16.mxu0 %v3383_v61 }
 0x164   : > { %2697 = vmatmul.mubr.msk.bf16.gmra.mrb[12].mxu0 %vm318_vm0, %v427_v44 }
 0x21f   : > { %v514_v38 = vpop.f32.mrb[0].mxu0 }
 0x220   : > { %v516_v39 = vpop.f32.mrb[1].mxu0 }
 0x221   : > { %v518_v45 = vpop.f32.mrb[2].mxu0 }
 0x222   : > { %v3544_v46 = vpack.c.bf16 %v518_v45, %v514_v38  ;;  %v520_v47 = vpop.f32.mrb[3].mxu0 }
 0x223   : > { %v3546_v48 = vpack.c.bf16 %v520_v47, %v516_v39  ;;  %v2895_v49 = vpop.f32.mrb[0].mxu1 }
 0x224   : > { %v587_v50 = vpop.f32.mrb[1].mxu1  ;;  %2909 = vmatprep.mubr.msk.bf16.mxu0 %vm318_vm0, %v3544_v46 }
 0x225   : > { %v2896_v51 = vpop.f32.mrb[2].mxu1  ;;  %3137 = vmatprep.subr.msk.bf16.mxu0 %vm318_vm0, %v3546_v48  ;;  %v643_v52 = vsel %vm318_vm0, %v3546_v48, 0 }
 0x226   : > { %v3554_v53 = vpack.c.bf16 %v2896_v51, %v2895_v49  ;;  %v590_v54 = vpop.f32.mrb[3].mxu1  ;;  %2902 = vmatpush3.bf16.xpose.msra.mxu0 %v643_v52 }
 0x227   : > { %v3556_v55 = vpack.c.bf16 %v590_v54, %v587_v50  ;;  %v524_v56 = vpop.f32.mrb[4].mxu0 }
 0x228   : > { %v526_v57 = vpop.f32.mrb[5].mxu0 }
 0x229   : > { %v528_v58 = vpop.f32.mrb[6].mxu0  ;;  %2917 = vmatprep.subr.bf16.mxu1 %v3556_v55 }
 0x22a   : > { %v3559_v59 = vpack.c.bf16 %v528_v58, %v524_v56  ;;  %v530_v60 = vpop.f32.mrb[7].mxu0  ;;  %2918 = vmatpush3.bf16.msra.mxu1 %v3556_v55 }
 0x22b   : > { %v3562_v61 = vpack.c.bf16 %v530_v60, %v526_v57  ;;  %v2899_v62 = vpop.f32.mrb[4].mxu1  ;;  %2919 = vmatprep.subr.bf16.mxu1 %v3554_v53 }
 0x22c   : > { %v603_v63 = vpop.f32.mrb[5].mxu1 }
 0x22d   : > { %v2900_v0 = vpop.f32.mrb[6].mxu1  ;;  %3138 = vmatprep.subr.msk.bf16.mxu0 %vm318_vm0, %v3562_v61  ;;  %v646_v1 = vsel %vm318_vm0, %v3562_v61, 0 }
 0x22e   : > { %v3569_v2 = vpack.c.bf16 %v2900_v0, %v2899_v62  ;;  %v606_v3 = vpop.f32.mrb[7].mxu1  ;;  %2904 = vmatpush3.bf16.xpose.msra.mxu0 %v646_v1  ;;  %2920 = vmatpush3.bf16.msra.mxu1 %v3554_v53 }
 0x22f   : > { %v3572_v4 = vpack.c.bf16 %v606_v3, %v603_v63  ;;  %v534_v5 = vpop.f32.mrb[8].mxu0 }
 0x230   : > { %v536_v6 = vpop.f32.mrb[9].mxu0 }
 0x231   : > { %v538_v7 = vpop.f32.mrb[10].mxu0  ;;  %2921 = vmatprep.subr.bf16.mxu1 %v3572_v4 }
 0x232   : > { %v3575_v8 = vpack.c.bf16 %v538_v7, %v534_v5  ;;  %v540_v9 = vpop.f32.mrb[11].mxu0  ;;  %2922 = vmatpush3.bf16.msra.mxu1 %v3572_v4 }
 0x233   : > { %v3578_v10 = vpack.c.bf16 %v540_v9, %v536_v6  ;;  %2923 = vmatprep.subr.bf16.mxu1 %v3569_v2 }
 0x235   : > { %3139 = vmatprep.subr.msk.bf16.mxu0 %vm318_vm0, %v3578_v10  ;;  %v649_v11 = vsel %vm318_vm0, %v3578_v10, 0 }
 0x236   : > { %2906 = vmatpush3.bf16.xpose.msra.mxu0 %v649_v11  ;;  %2924 = vmatpush3.bf16.msra.mxu1 %v3569_v2 }
 0x237   : > { %v544_v12 = vpop.f32.mrb[12].mxu0 }
 0x238   : > { %v546_v13 = vpop.f32.mrb[13].mxu0 }
 0x239   : > { %v548_v14 = vpop.f32.mrb[14].mxu0 }
 0x23a   : > { %v3586_v15 = vpack.c.bf16 %v548_v14, %v544_v12  ;;  %v550_v16 = vpop.f32.mrb[15].mxu0 }
 0x23b   : > { %v3588_v17 = vpack.c.bf16 %v550_v16, %v546_v13 }
 0x23d   : > { %3140 = vmatprep.subr.msk.bf16.mxu0 %vm318_vm0, %v3588_v17  ;;  %v652_v18 = vsel %vm318_vm0, %v3588_v17, 0 }
 0x23e   : > { %2908 = vmatpush3.bf16.xpose.msra.mxu0 %v652_v18 }
 0x245   : > { %2910 = vmatmul.mubr.msk.bf16.vlgmr.msra.gmra.mrb[16].mxu0 %vm318_vm0, %v3559_v59 }
 0x246   : > { %2913 = vmatprep.mubr.msk.bf16.mxu0 %vm318_vm0, %v3575_v8 }
 0x24d   : > { %2914 = vmatmul.mubr.msk.bf16.gmra.mrb[20].mxu0 %vm318_vm0, %v3586_v15 }
 0x318   : > { %v2911_v19 = vpop.f32.mrb[16].mxu0 }
 0x319   : > { %v688_v22 = vpop.f32.mrb[17].mxu0  ;;  %v726_v27 = vsel %vm719_vm1, %v2911_v19, -inf }
 0x31a   : > { %v2912_v23 = vpop.f32.mrb[18].mxu0  ;;  %v720_v24 = vsel %vm719_vm1, %v688_v22, -inf }
 0x31b   : > { %721 = vmax.xlane.f32.xlu0 %v720_v24  ;;  %v691_v25 = vpop.f32.mrb[19].mxu0  ;;  %v729_v31 = vsel %vm719_vm1, %v2912_v23, -inf }
 0x31c   : > { %v723_v26 = vsel %vm719_vm1, %v691_v25, -inf }
 0x31d   : > { %724 = vmax.xlane.f32.xlu1 %v723_v26 }
 0x31f   : > { %727 = vmax.xlane.f32.xlu0 %v726_v27 }
 0x320   : > { %v2915_v30 = vpop.f32.mrb[20].mxu0 }
 0x321   : > { %730 = vmax.xlane.f32.xlu1 %v729_v31  ;;  %v704_v32 = vpop.f32.mrb[21].mxu0  ;;  %v738_v37 = vsel %vm719_vm1, %v2915_v30, -inf }
 0x322   : > { %v2916_v33 = vpop.f32.mrb[22].mxu0  ;;  %v732_v34 = vsel %vm719_vm1, %v704_v32, -inf }
 0x323   : > { %733 = vmax.xlane.f32.xlu0 %v732_v34  ;;  %v707_v35 = vpop.f32.mrb[23].mxu0  ;;  %v741_v40 = vsel %vm719_vm1, %v2916_v33, -inf }
 0x324   : > { %v735_v36 = vsel %vm719_vm1, %v707_v35, -inf }
 0x325   : > { %736 = vmax.xlane.f32.xlu1 %v735_v36 }
 0x327   : > { %739 = vmax.xlane.f32.xlu0 %v738_v37 }
 0x329   : > { %742 = vmax.xlane.f32.xlu1 %v741_v40 }
 0x3a8   : > { %v722_v20 = vpop.xlane.xlu0 %721 }
 0x3a9   : > { %v744_v28 = vsub.f32 %v688_v22, %v722_v20 }
 0x3aa   : > { %v725_v41 = vpop.xlane.xlu1 %724 }
 0x3ab   : > { %v745_v43 = vsub.f32 %v691_v25, %v725_v41  ;;  %v752_v29 = vmul.f32 1.442695, %v744_v28 }
 0x3ac   : > { %v728_v42 = vpop.xlane.xlu0 %727 }
 0x3ad   : > { %v746_v21 = vsub.f32 %v2911_v19, %v728_v42  ;;  %v754_v47 = vmul.f32 1.442695, %v745_v43 }
 0x3ae   : > { %v731_v44 = vpop.xlane.xlu1 %730 }
 0x3af   : > { %v756_v38 = vmul.f32 1.442695, %v746_v21  ;;  %v747_v39 = vsub.f32 %v2912_v23, %v731_v44 }
 0x3b0   : > { %v734_v45 = vpop.xlane.xlu0 %733 }
 0x3b1   : > { %3207 = vpow2.f32 %v756_v38  ;;  %v758_v49 = vmul.f32 1.442695, %v747_v39  ;;  %v748_v50 = vsub.f32 %v704_v32, %v734_v45 }
 0x3b2   : > { %3209 = vpow2.f32 %v752_v29  ;;  %v737_v11 = vpop.xlane.xlu1 %736 }
 0x3b3   : > { %3211 = vpow2.f32 %v758_v49  ;;  %v760_v54 = vmul.f32 1.442695, %v748_v50  ;;  %v749_v14 = vsub.f32 %v707_v35, %v737_v11 }
 0x3b4   : > { %v740_v51 = vpop.xlane.xlu0 %739  ;;  %3213 = vpow2.f32 %v754_v47 }
 0x3b5   : > { %v750_v52 = vsub.f32 %v2915_v30, %v740_v51  ;;  %v762_v18 = vmul.f32 1.442695, %v749_v14 }
 0x3b6   : > { %v743_v12 = vpop.xlane.xlu1 %742 }
 0x3b7   : > { %v764_v56 = vmul.f32 1.442695, %v750_v52  ;;  %v751_v13 = vsub.f32 %v2916_v33, %v743_v12 }
 0x3b9   : > { %3215 = vpow2.f32 %v764_v56  ;;  %v766_v16 = vmul.f32 1.442695, %v751_v13 }
 0x3ba   : > { %3217 = vpow2.f32 %v760_v54 }
 0x3bb   : > { %v3608_v57 = vpop.eup %3207  ;;  %3219 = vpow2.f32 %v766_v16 }
 0x3bc   : > { %v3610_v58 = vpop.eup %3209  ;;  %v774_v60 = vsel %vm719_vm1, %v3608_v57, 0.0  ;;  %3221 = vpow2.f32 %v762_v18 }
 0x3bd   : > { %v3212_v62 = vpop.eup %3211  ;;  %775 = vadd.xlane.f32.xlu0 %v774_v60  ;;  %v768_v1 = vsel %vm719_vm1, %v3610_v58, 0.0 }
 0x3be   : > { %v777_v63 = vsel %vm719_vm1, %v3212_v62, 0.0  ;;  %v3214_v0 = vpop.eup %3213 }
 0x3bf   : > { %778 = vadd.xlane.f32.xlu1 %v777_v63  ;;  %v771_v3 = vsel %vm719_vm1, %v3214_v0, 0.0 }
 0x3c1   : > { %769 = vadd.xlane.f32.xlu0 %v768_v1 }
 0x3c3   : > { %v3618_v5 = vpop.eup %3215  ;;  %772 = vadd.xlane.f32.xlu1 %v771_v3 }
 0x3c4   : > { %v786_v6 = vsel %vm719_vm1, %v3618_v5, 0.0  ;;  %v3622_v7 = vpop.eup %3217 }
 0x3c5   : > { %787 = vadd.xlane.f32.xlu0 %v786_v6  ;;  %v780_v9 = vsel %vm719_vm1, %v3622_v7, 0.0  ;;  %v3644_v19 = vpop.eup %3219 }
 0x3c6   : > { %v789_v22 = vsel %vm719_vm1, %v3644_v19, 0.0  ;;  %v3648_v23 = vpop.eup %3221 }
 0x3c7   : > { %v783_v24 = vsel %vm719_vm1, %v3648_v23, 0.0 }
 0x3c9   : > { %781 = vadd.xlane.f32.xlu0 %v780_v9 }
 0x3d4   : > { %923 = vrot.lane.b32.xlu1 %v3562_v61, %s3384_s24 }
 0x3d8   : > { %925 = vrot.lane.b32.xlu1 %v3578_v10, %s3384_s24 }
 0x3df   : > { %921 = vrot.lane.b32.xlu0 %v3546_v48, %s3384_s24 }
 0x3e3   : > { %909 = vrot.lane.b32.xlu0 %v3544_v46, %s3384_s24 }
 0x3e7   : > { %913 = vrot.lane.b32.xlu0 %v3575_v8, %s3384_s24 }
 0x3eb   : > { %1405 = vrot.lane.b32.xlu0 %v3546_v48, %s3385_s25 }
 0x3ef   : > { %1409 = vrot.lane.b32.xlu0 %v3578_v10, %s3385_s25 }
 0x3f3   : > { %1397 = vrot.lane.b32.xlu0 %v3544_v46, %s3385_s25 }
 0x3f7   : > { %1401 = vrot.lane.b32.xlu0 %v3575_v8, %s3385_s25 }
 0x3fc   : > { %790 = vadd.xlane.f32.xlu1 %v789_v22 }
 0x400   : > { %784 = vadd.xlane.f32.xlu1 %v783_v24 }
 0x411   : > { %927 = vrot.lane.b32.xlu1 %v3588_v17, %s3384_s24 }
 0x415   : > { %911 = vrot.lane.b32.xlu1 %v3559_v59, %s3384_s24 }
 0x419   : > { %915 = vrot.lane.b32.xlu1 %v3586_v15, %s3384_s24 }
 0x41d   : > { %1407 = vrot.lane.b32.xlu1 %v3562_v61, %s3385_s25 }
 0x421   : > { %1411 = vrot.lane.b32.xlu1 %v3588_v17, %s3385_s25 }
 0x425   : > { %1399 = vrot.lane.b32.xlu1 %v3559_v59, %s3385_s25 }
 0x429   : > { %1403 = vrot.lane.b32.xlu1 %v3586_v15, %s3385_s25 }
 0x44a   : > { %v776_v25 = vpop.xlane.xlu0 %775 }
 0x44c   : > { %v779_v26 = vpop.xlane.xlu1 %778 }
 0x44d   : > { %3223 = vrcp.f32 %v779_v26 }
 0x44e   : > { %v770_v27 = vpop.xlane.xlu0 %769 }
 0x44f   : > { %3225 = vrcp.f32 %v770_v27 }
 0x450   : > { %3227 = vrcp.f32 %v776_v25  ;;  %v773_v30 = vpop.xlane.xlu1 %772 }
 0x451   : > { %3229 = vrcp.f32 %v773_v30 }
 0x452   : > { %v788_v31 = vpop.xlane.xlu0 %787 }
 0x454   : > { %v924_v29 = vpop.permute.xlu1 %923 }
 0x455   : > { %v945_v44 = vsel %vm318_vm0, %v924_v29, 0 }
 0x456   : > { %v782_v32 = vpop.xlane.xlu0 %781 }
 0x457   : > { %v3224_v33 = vpop.eup %3223 }
 0x458   : > { %v811_v40 = vmul.f32 %v3224_v33, %v3212_v62  ;;  %v926_v38 = vpop.permute.xlu1 %925 }
 0x459   : > { %v3226_v34 = vpop.eup %3225  ;;  %v948_v39 = vsel %vm318_vm0, %v926_v38, 0 }
 0x45a   : > { %v3228_v35 = vpop.eup %3227  ;;  %v922_v36 = vpop.permute.xlu0 %921  ;;  %v808_v20 = vmul.f32 %v3226_v34, %v3610_v58 }
 0x45b   : > { %v3230_v37 = vpop.eup %3229  ;;  %3141 = vmatprep.subr.msk.bf16.mxu1 %vm318_vm0, %v922_v36  ;;  %v810_v41 = vmul.f32 %v3228_v35, %v3608_v57  ;;  %v942_v21 = vsel %vm318_vm0, %v922_v36, 0 }
 0x45c   : > { %v809_v28 = vmul.f32 %v3230_v37, %v3214_v0 }
 0x45d   : > { %v817_v43 = vpack.c.bf16 %v811_v40, %v810_v41 }
 0x45e   : > { %v816_v42 = vpack.c.bf16 %v809_v28, %v808_v20  ;;  %v910_v45 = vpop.permute.xlu0 %909 }
 0x460   : > { %2925 = vmatprep.mubr.msk.bf16.mxu1 %vm719_vm1, %v816_v42 }
 0x461   : > { %2926 = vmatmul.mubr.msk.bf16.vlgmr.msra.gmra.mrb[8].mxu1 %vm719_vm1, %v817_v43 }
 0x462   : > { %2934 = vmatpush3.bf16.xpose.msra.mxu1 %v942_v21  ;;  %v914_v49 = vpop.permute.xlu0 %913 }
 0x463   : > { %3142 = vmatprep.subr.msk.bf16.mxu1 %vm318_vm0, %v924_v29 }
 0x466   : > { %v1406_v54 = vpop.permute.xlu0 %1405 }
 0x467   : > { %v1426_v12 = vsel %vm318_vm0, %v1406_v54, 0 }
 0x46a   : > { %2936 = vmatpush3.bf16.xpose.msra.mxu1 %v945_v44 }
 0x46b   : > { %3143 = vmatprep.subr.msk.bf16.mxu1 %vm318_vm0, %v926_v38 }
 0x472   : > { %2938 = vmatpush3.bf16.xpose.msra.mxu1 %v948_v39 }
 0x489   : > { %v791_v47 = vpop.xlane.xlu1 %790 }
 0x48a   : > { %3231 = vrcp.f32 %v791_v47 }
 0x48b   : > { %3233 = vrcp.f32 %v782_v32 }
 0x48c   : > { %3235 = vrcp.f32 %v788_v31 }
 0x48d   : > { %v785_v50 = vpop.xlane.xlu1 %784 }
 0x48e   : > { %3237 = vrcp.f32 %v785_v50 }
 0x491   : > { %v928_v51 = vpop.permute.xlu1 %927 }
 0x492   : > { %v951_v52 = vsel %vm318_vm0, %v928_v51, 0  ;;  %3144 = vmatprep.subr.msk.bf16.mxu1 %vm318_vm0, %v928_v51 }
 0x493   : > { %2940 = vmatpush3.bf16.xpose.msra.mxu1 %v951_v52 }
 0x494   : > { %3145 = vmatprep.subr.msk.bf16.mxu1 %vm318_vm0, %v1406_v54  ;;  %v3232_v56 = vpop.eup %3231 }
 0x495   : > { %v3234_v57 = vpop.eup %3233  ;;  %v815_v62 = vmul.f32 %v3232_v56, %v3644_v19  ;;  %v912_v3 = vpop.permute.xlu1 %911 }
 0x496   : > { %v3236_v58 = vpop.eup %3235  ;;  %v812_v63 = vmul.f32 %v3234_v57, %v3622_v7  ;;  %v1410_v7 = vpop.permute.xlu0 %1409 }
 0x497   : > { %v814_v1 = vmul.f32 %v3236_v58, %v3618_v5  ;;  %v1432_v16 = vsel %vm318_vm0, %v1410_v7, 0 }
 0x498   : > { %v3238_v60 = vpop.eup %3237 }
 0x499   : > { %v813_v0 = vmul.f32 %v3238_v60, %v3648_v23  ;;  %v819_v9 = vpack.c.bf16 %v815_v62, %v814_v1  ;;  %v916_v11 = vpop.permute.xlu1 %915 }
 0x49a   : > { %v1398_v5 = vpop.permute.xlu0 %1397 }
 0x49b   : > { %v818_v6 = vpack.c.bf16 %v813_v0, %v812_v63 }
 0x49d   : > { %2929 = vmatprep.mubr.msk.bf16.mxu1 %vm719_vm1, %v818_v6  ;;  %v1408_v13 = vpop.permute.xlu1 %1407 }
 0x49e   : > { %2930 = vmatmul.mubr.msk.bf16.gmra.mrb[12].mxu1 %vm719_vm1, %v819_v9  ;;  %v1429_v14 = vsel %vm318_vm0, %v1408_v13, 0  ;;  %v1402_v23 = vpop.permute.xlu0 %1401 }
 0x49f   : > { %2941 = vmatprep.mubr.msk.bf16.mxu1 %vm318_vm0, %v910_v45 }
 0x4a1   : > { %v1412_v18 = vpop.permute.xlu1 %1411 }
 0x4a2   : > { %v1435_v19 = vsel %vm318_vm0, %v1412_v18, 0 }
 0x4a5   : > { %v1400_v22 = vpop.permute.xlu1 %1399 }
 0x4a6   : > { %2942 = vmatmul.mubr.msk.bf16.vlgmr.msra.gmra.mrb[16].mxu1 %vm318_vm0, %v912_v3 }
 0x4a7   : > { %2990 = vmatpush3.bf16.xpose.msra.mxu1 %v1426_v12  ;;  %2945 = vmatprep.mubr.msk.bf16.mxu1 %vm318_vm0, %v914_v49 }
 0x4a8   : > { %3146 = vmatprep.subr.msk.bf16.mxu1 %vm318_vm0, %v1408_v13 }
 0x4a9   : > { %v1404_v24 = vpop.permute.xlu1 %1403 }
 0x4ae   : > { %2946 = vmatmul.mubr.msk.bf16.gmra.mrb[20].mxu1 %vm318_vm0, %v916_v11 }
 0x4af   : > { %2992 = vmatpush3.bf16.xpose.msra.mxu1 %v1429_v14  ;;  %2997 = vmatprep.mubr.msk.bf16.mxu1 %vm318_vm0, %v1398_v5 }
 0x4b0   : > { %3147 = vmatprep.subr.msk.bf16.mxu1 %vm318_vm0, %v1410_v7 }
 0x4b7   : > { %2994 = vmatpush3.bf16.xpose.msra.mxu1 %v1432_v16 }
 0x4b8   : > { %3148 = vmatprep.subr.msk.bf16.mxu1 %vm318_vm0, %v1412_v18 }
 0x4bf   : > { %2996 = vmatpush3.bf16.xpose.msra.mxu1 %v1435_v19 }
 0x4c6   : > { %2998 = vmatmul.mubr.msk.bf16.vlgmr.msra.gmra.mrb[24].mxu1 %vm318_vm0, %v1400_v22 }
 0x4c7   : > { %3001 = vmatprep.mubr.msk.bf16.mxu1 %vm318_vm0, %v1402_v23 }
 0x4ce   : > { %3002 = vmatmul.mubr.msk.bf16.gmra.mrb[28].mxu1 %vm318_vm0, %v1404_v24 }
 0x534   : > { %v3700_v25 = vpop.f32.mrb[8].mxu1 }
 0x535   : > { %v3702_v26 = vpop.f32.mrb[9].mxu1 }
 0x536   : > { %v3704_v27 = vpop.f32.mrb[10].mxu1 }
 0x537   : > { %v898_v30 = vpack.c.bf16 %v3704_v27, %v3700_v25  ;;  %v3708_v31 = vpop.f32.mrb[11].mxu1 }
 0x538   : > { %v897_v32 = vpack.c.bf16 %v3708_v31, %v3702_v26 }
 0x571   : > { %v3712_v33 = vpop.f32.mrb[12].mxu1 }
 0x572   : > { %v3714_v34 = vpop.f32.mrb[13].mxu1 }
 0x573   : > { %v3716_v35 = vpop.f32.mrb[14].mxu1 }
 0x574   : > { %v900_v36 = vpack.c.bf16 %v3716_v35, %v3712_v33  ;;  %v3720_v37 = vpop.f32.mrb[15].mxu1 }
 0x575   : > { %v899_v40 = vpack.c.bf16 %v3720_v37, %v3714_v34 }
 0x579   : > { %v2943_v20 = vpop.f32.mrb[16].mxu1 }
 0x57a   : > { %v987_v28 = vpop.f32.mrb[17].mxu1  ;;  %v1024_v29 = vsel %vm719_vm1, %v2943_v20, -inf }
 0x57b   : > { %v2944_v41 = vpop.f32.mrb[18].mxu1  ;;  %v1018_v42 = vsel %vm719_vm1, %v987_v28, -inf }
 0x57c   : > { %1019 = vmax.xlane.f32.xlu0 %v1018_v42  ;;  %v990_v43 = vpop.f32.mrb[19].mxu1  ;;  %v1027_v45 = vsel %vm719_vm1, %v2944_v41, -inf }
 0x57d   : > { %v1021_v21 = vsel %vm719_vm1, %v990_v43, -inf }
 0x57e   : > { %1022 = vmax.xlane.f32.xlu1 %v1021_v21 }
 0x580   : > { %1025 = vmax.xlane.f32.xlu0 %v1024_v29 }
 0x581   : > { %v2947_v44 = vpop.f32.mrb[20].mxu1 }
 0x582   : > { %v1003_v38 = vpop.f32.mrb[21].mxu1  ;;  %v1036_v52 = vsel %vm719_vm1, %v2947_v44, -inf }
 0x583   : > { %v3727_v39 = vpop.f32.mrb[22].mxu1  ;;  %v1030_v50 = vsel %vm719_vm1, %v1003_v38, -inf }
 0x584   : > { %1028 = vmax.xlane.f32.xlu0 %v1027_v45  ;;  %v3730_v47 = vpop.f32.mrb[23].mxu1  ;;  %v1039_v51 = vsel %vm719_vm1, %v3727_v39, -inf }
 0x585   : > { %v1033_v49 = vsel %vm719_vm1, %v3730_v47, -inf }
 0x586   : > { %1034 = vmax.xlane.f32.xlu1 %v1033_v49 }
 0x588   : > { %1031 = vmax.xlane.f32.xlu0 %v1030_v50 }
 0x58a   : > { %1040 = vmax.xlane.f32.xlu1 %v1039_v51 }
 0x58c   : > { %1037 = vmax.xlane.f32.xlu0 %v1036_v52 }
 0x599   : > { %v3738_v54 = vpop.f32.mrb[24].mxu1 }
 0x59a   : > { %v3740_v56 = vpop.f32.mrb[25].mxu1 }
 0x59b   : > { %v3742_v57 = vpop.f32.mrb[26].mxu1 }
 0x59c   : > { %v3744_v58 = vpop.f32.mrb[27].mxu1 }
 0x5a1   : > { %v3746_v60 = vpop.f32.mrb[28].mxu1 }
 0x5a2   : > { %v3748_v62 = vpop.f32.mrb[29].mxu1 }
 0x5a3   : > { %v3750_v63 = vpop.f32.mrb[30].mxu1 }
 0x5a4   : > { %v3752_v0 = vpop.f32.mrb[31].mxu1 }
 0x609   : > { %v1020_v1 = vpop.xlane.xlu0 %1019 }
 0x60a   : > { %v1042_v3 = vsub.f32 %v987_v28, %v1020_v1 }
 0x60b   : > { %v1023_v6 = vpop.xlane.xlu1 %1022 }
 0x60c   : > { %v1050_v12 = vmul.f32 1.442695, %v1042_v3  ;;  %v1043_v13 = vsub.f32 %v990_v43, %v1023_v6 }
 0x60d   : > { %v1026_v9 = vpop.xlane.xlu0 %1025 }
 0x60e   : > { %v1044_v11 = vsub.f32 %v2943_v20, %v1026_v9  ;;  %v1052_v16 = vmul.f32 1.442695, %v1043_v13 }
 0x610   : > { %v1054_v7 = vmul.f32 1.442695, %v1044_v11 }
 0x611   : > { %v1029_v5 = vpop.xlane.xlu0 %1028 }
 0x612   : > { %3239 = vpow2.f32 %v1054_v7  ;;  %v1045_v14 = vsub.f32 %v2944_v41, %v1029_v5  ;;  %v1514_v7 = vsel %vm719_vm1, %v3748_v62, -inf  ;;  %v1520_v5 = vsel %vm719_vm1, %v3746_v60, -inf }
 0x613   : > { %3241 = vpow2.f32 %v1050_v12  ;;  %v1035_v1 = vpop.xlane.xlu1 %1034 }
 0x614   : > { %v1056_v18 = vmul.f32 1.442695, %v1045_v14  ;;  %v1047_v9 = vsub.f32 %v3730_v47, %v1035_v1  ;;  %v1511_v47 = vsel %vm719_vm1, %v3742_v57, -inf }
 0x615   : > { %v1032_v19 = vpop.xlane.xlu0 %1031 }
 0x616   : > { %3243 = vpow2.f32 %v1056_v18  ;;  %v1046_v22 = vsub.f32 %v1003_v38, %v1032_v19  ;;  %v1060_v12 = vmul.f32 1.442695, %v1047_v9 }
 0x617   : > { %3245 = vpow2.f32 %v1052_v16  ;;  %v1041_v3 = vpop.xlane.xlu1 %1040 }
 0x618   : > { %v1058_v28 = vmul.f32 1.442695, %v1046_v22  ;;  %v1049_v6 = vsub.f32 %v3727_v39, %v1041_v3 }
 0x619   : > { %v1038_v23 = vpop.xlane.xlu0 %1037 }
 0x61a   : > { %v1048_v24 = vsub.f32 %v2947_v44, %v1038_v23  ;;  %v1064_v11 = vmul.f32 1.442695, %v1049_v6 }
 0x61c   : > { %v3754_v42 = vpop.eup %3239  ;;  %v1062_v21 = vmul.f32 1.442695, %v1048_v24 }
 0x61d   : > { %v1072_v20 = vsel %vm719_vm1, %v3754_v42, 0.0  ;;  %v3758_v43 = vpop.eup %3241 }
 0x61e   : > { %3247 = vpow2.f32 %v1062_v21  ;;  %1073 = vadd.xlane.f32.xlu0 %v1072_v20  ;;  %v1066_v29 = vsel %vm719_vm1, %v3758_v43, 0.0 }
 0x61f   : > { %3249 = vpow2.f32 %v1058_v28 }
 0x620   : > { %v3760_v41 = vpop.eup %3243  ;;  %3251 = vpow2.f32 %v1064_v11 }
 0x621   : > { %v1075_v44 = vsel %vm719_vm1, %v3760_v41, 0.0  ;;  %v3766_v38 = vpop.eup %3245  ;;  %3253 = vpow2.f32 %v1060_v12 }
 0x622   : > { %1067 = vadd.xlane.f32.xlu0 %v1066_v29  ;;  %1076 = vadd.xlane.f32.xlu1 %v1075_v44  ;;  %v1069_v45 = vsel %vm719_vm1, %v3766_v38, 0.0 }
 0x626   : > { %1070 = vadd.xlane.f32.xlu1 %v1069_v45 }
 0x628   : > { %v3770_v49 = vpop.eup %3247 }
 0x629   : > { %v1084_v50 = vsel %vm719_vm1, %v3770_v49, 0.0  ;;  %v3774_v51 = vpop.eup %3249 }
 0x62a   : > { %1085 = vadd.xlane.f32.xlu0 %v1084_v50  ;;  %v1078_v52 = vsel %vm719_vm1, %v3774_v51, 0.0  ;;  %v3794_v13 = vpop.eup %3251 }
 0x62b   : > { %v3798_v39 = vpop.eup %3253 }
 0x62e   : > { %1079 = vadd.xlane.f32.xlu0 %v1078_v52 }
 0x637   : > { %1124 = vrot.lane.b32.xlu1 %v3554_v53, %s3384_s24 }
 0x63b   : > { %1126 = vrot.lane.b32.xlu1 %v3572_v4, %s3384_s24 }
 0x644   : > { %1122 = vrot.lane.b32.xlu0 %v3556_v55, %s3384_s24 }
 0x648   : > { %1804 = vrot.lane.b32.xlu0 %v3546_v48, %s3386_s26  ;;  %v1087_v48 = vsel %vm719_vm1, %v3794_v13, 0.0 }
 0x64c   : > { %1808 = vrot.lane.b32.xlu0 %v3578_v10, %s3386_s26  ;;  %v1081_v10 = vsel %vm719_vm1, %v3798_v39, 0.0 }
 0x650   : > { %1796 = vrot.lane.b32.xlu0 %v3544_v46, %s3386_s26  ;;  %v1502_v46 = vsel %vm719_vm1, %v3740_v56, -inf }
 0x654   : > { %1800 = vrot.lane.b32.xlu0 %v3575_v8, %s3386_s26  ;;  %v1508_v8 = vsel %vm719_vm1, %v3738_v54, -inf }
 0x65f   : > { %1088 = vadd.xlane.f32.xlu1 %v1087_v48 }
 0x663   : > { %1082 = vadd.xlane.f32.xlu1 %v1081_v10 }
 0x673   : > { %1503 = vmax.xlane.f32.xlu0 %v1502_v46 }
 0x674   : > { %1128 = vrot.lane.b32.xlu1 %v3569_v2, %s3384_s24 }
 0x677   : > { %1509 = vmax.xlane.f32.xlu0 %v1508_v8 }
 0x678   : > { %1806 = vrot.lane.b32.xlu1 %v3562_v61, %s3386_s26  ;;  %v1505_v61 = vsel %vm719_vm1, %v3744_v58, -inf }
 0x67b   : > { %1512 = vmax.xlane.f32.xlu0 %v1511_v47 }
 0x67c   : > { %1810 = vrot.lane.b32.xlu1 %v3588_v17, %s3386_s26  ;;  %v1517_v17 = vsel %vm719_vm1, %v3752_v0, -inf }
 0x67f   : > { %1515 = vmax.xlane.f32.xlu0 %v1514_v7 }
 0x680   : > { %1798 = vrot.lane.b32.xlu1 %v3559_v59, %s3386_s26  ;;  %v1523_v59 = vsel %vm719_vm1, %v3750_v63, -inf }
 0x683   : > { %1521 = vmax.xlane.f32.xlu0 %v1520_v5 }
 0x684   : > { %1802 = vrot.lane.b32.xlu1 %v3586_v15, %s3386_s26 }
 0x6a8   : > { %1506 = vmax.xlane.f32.xlu1 %v1505_v61 }
 0x6ab   : > { %v1074_v14 = vpop.xlane.xlu0 %1073 }
 0x6ac   : > { %1518 = vmax.xlane.f32.xlu1 %v1517_v17 }
 0x6af   : > { %v1068_v16 = vpop.xlane.xlu0 %1067  ;;  %v1077_v18 = vpop.xlane.xlu1 %1076 }
 0x6b0   : > { %1524 = vmax.xlane.f32.xlu1 %v1523_v59  ;;  %3255 = vrcp.f32 %v1068_v16 }
 0x6b3   : > { %v1071_v19 = vpop.xlane.xlu1 %1070 }
 0x6b4   : > { %3257 = vrcp.f32 %v1071_v19 }
 0x6b5   : > { %3259 = vrcp.f32 %v1077_v18 }
 0x6b6   : > { %3261 = vrcp.f32 %v1074_v14 }
 0x6b7   : > { %v1086_v22 = vpop.xlane.xlu0 %1085  ;;  %v1125_v28 = vpop.permute.xlu1 %1124 }
 0x6ba   : > { %v3256_v23 = vpop.eup %3255 }
 0x6bb   : > { %v1080_v15 = vpop.xlane.xlu0 %1079  ;;  %v1106_v20 = vmul.f32 %v3256_v23, %v3758_v43  ;;  %v1127_v52 = vpop.permute.xlu1 %1126 }
 0x6be   : > { %v3258_v24 = vpop.eup %3257 }
 0x6bf   : > { %v1123_v21 = vpop.permute.xlu0 %1122  ;;  %v1107_v29 = vmul.f32 %v3258_v24, %v3766_v38  ;;  %v3260_v3 = vpop.eup %3259 }
 0x6c0   : > { %2949 = vmatprep.subr.bf16.mxu0 %v1123_v21  ;;  %v3262_v9 = vpop.eup %3261  ;;  %v1109_v11 = vmul.f32 %v3260_v3, %v3760_v41 }
 0x6c1   : > { %2950 = vmatpush3.bf16.msra.mxu0 %v1123_v21  ;;  %v1114_v44 = vpack.c.bf16 %v1107_v29, %v1106_v20  ;;  %v1108_v48 = vmul.f32 %v3262_v9, %v3754_v42 }
 0x6c2   : > { %2951 = vmatprep.subr.bf16.mxu0 %v1125_v28 }
 0x6c3   : > { %v1805_v45 = vpop.permute.xlu0 %1804  ;;  %2957 = vmatprep.mubr.msk.bf16.mxu0 %vm719_vm1, %v1114_v44  ;;  %v1115_v10 = vpack.c.bf16 %v1109_v11, %v1108_v48 }
 0x6c4   : > { %v1825_v50 = vsel %vm318_vm0, %v1805_v45, 0  ;;  %3149 = vmatprep.subr.msk.bf16.mxu1 %vm318_vm0, %v1805_v45 }
 0x6c5   : > { %2952 = vmatpush3.bf16.msra.mxu0 %v1125_v28  ;;  %3034 = vmatpush3.bf16.xpose.msra.mxu1 %v1825_v50 }
 0x6c6   : > { %2953 = vmatprep.subr.bf16.mxu0 %v1127_v52 }
 0x6c7   : > { %v1809_v1 = vpop.permute.xlu0 %1808 }
 0x6c9   : > { %2954 = vmatpush3.bf16.msra.mxu0 %v1127_v52 }
 0x6cb   : > { %v1797_v43 = vpop.permute.xlu0 %1796 }
 0x6cc   : > { %3041 = vmatprep.mubr.msk.bf16.mxu1 %vm318_vm0, %v1797_v43 }
 0x6cf   : > { %v1801_v42 = vpop.permute.xlu0 %1800 }
 0x6ec   : > { %v1089_v38 = vpop.xlane.xlu1 %1088 }
 0x6ed   : > { %3263 = vrcp.f32 %v1089_v38 }
 0x6ee   : > { %3265 = vrcp.f32 %v1080_v15 }
 0x6ef   : > { %3267 = vrcp.f32 %v1086_v22  ;;  %v1831_v22 = vsel %vm318_vm0, %v1809_v1, 0 }
 0x6f0   : > { %v1083_v6 = vpop.xlane.xlu1 %1082 }
 0x6f1   : > { %3269 = vrcp.f32 %v1083_v6 }
 0x6f4   : > { %v1129_v12 = vpop.permute.xlu1 %1128 }
 0x6f5   : > { %2955 = vmatprep.subr.bf16.mxu0 %v1129_v12 }
 0x6f6   : > { %2956 = vmatpush3.bf16.msra.mxu0 %v1129_v12 }
 0x6f7   : > { %v3264_v46 = vpop.eup %3263 }
 0x6f8   : > { %v1807_v8 = vpop.permute.xlu1 %1806  ;;  %v3266_v47 = vpop.eup %3265  ;;  %v1113_v41 = vmul.f32 %v3264_v46, %v3794_v13  ;;  %v3173_v46 = vld [vmem:[%s4226_s2 + $0x10] sm:$0xff]  }
 0x6f9   : > { %v1828_v7 = vsel %vm318_vm0, %v1807_v8, 0  ;;  %2958 = vmatmul.mubr.msk.bf16.vlgmr.msra.gmra.mrb[24].mxu0 %vm719_vm1, %v1115_v10  ;;  %3150 = vmatprep.subr.msk.bf16.mxu1 %vm318_vm0, %v1807_v8  ;;  %v3268_v5 = vpop.eup %3267  ;;  %v1110_v14 = vmul.f32 %v3266_v47, %v3774_v51 }
 0x6fa   : > { %3036 = vmatpush3.bf16.xpose.msra.mxu1 %v1828_v7  ;;  %v1112_v16 = vmul.f32 %v3268_v5, %v3770_v49  ;;  %2965 = vmatprep.subr.bf16.mxu0 %v3173_v46  ;;  %v3175_v5 = vld [vmem:[%s4226_s2] sm:$0xff]  }
 0x6fb   : > { %v3270_v61 = vpop.eup %3269  ;;  %3151 = vmatprep.subr.msk.bf16.mxu1 %vm318_vm0, %v1809_v1  ;;  %2966 = vmatpush3.bf16.msra.mxu0 %v3173_v46 }
 0x6fc   : > { %v1111_v17 = vmul.f32 %v3270_v61, %v3798_v39  ;;  %v1117_v59 = vpack.c.bf16 %v1113_v41, %v1112_v16  ;;  %v1811_v15 = vpop.permute.xlu1 %1810 }
 0x6fd   : > { %v1834_v28 = vsel %vm318_vm0, %v1811_v15, 0 }
 0x6fe   : > { %v1116_v18 = vpack.c.bf16 %v1111_v17, %v1110_v14 }
 0x700   : > { %v1504_v19 = vpop.xlane.xlu0 %1503  ;;  %2961 = vmatprep.mubr.msk.bf16.mxu0 %vm719_vm1, %v1116_v18  ;;  %v1799_v44 = vpop.permute.xlu1 %1798 }
 0x701   : > { %2962 = vmatmul.mubr.msk.bf16.gmra.mrb[28].mxu0 %vm719_vm1, %v1117_v59  ;;  %v1526_v13 = vsub.f32 %v3740_v56, %v1504_v19 }
 0x702   : > { %3038 = vmatpush3.bf16.xpose.msra.mxu1 %v1831_v22 }
 0x703   : > { %3152 = vmatprep.subr.msk.bf16.mxu1 %vm318_vm0, %v1811_v15  ;;  %v1534_v23 = vmul.f32 1.442695, %v1526_v13 }
 0x704   : > { %v1510_v51 = vpop.xlane.xlu0 %1509  ;;  %v1803_v3 = vpop.permute.xlu1 %1802 }
 0x705   : > { %v1528_v39 = vsub.f32 %v3738_v54, %v1510_v51 }
 0x707   : > { %v1538_v49 = vmul.f32 1.442695, %v1528_v39 }
 0x708   : > { %v1513_v24 = vpop.xlane.xlu0 %1512 }
 0x709   : > { %3271 = vpow2.f32 %v1538_v49  ;;  %v1529_v21 = vsub.f32 %v3742_v57, %v1513_v24 }
 0x70a   : > { %3040 = vmatpush3.bf16.xpose.msra.mxu1 %v1834_v28  ;;  %3273 = vpow2.f32 %v1534_v23  ;;  %v3176_v28 = vld [vmem:[%s4226_s2 + $0x8] sm:$0xff]  }
 0x70b   : > { %v1540_v20 = vmul.f32 1.442695, %v1529_v21 }
 0x70c   : > { %v1516_v29 = vpop.xlane.xlu0 %1515 }
 0x70d   : > { %3275 = vpow2.f32 %v1540_v20  ;;  %v1530_v56 = vsub.f32 %v3748_v62, %v1516_v29 }
 0x70f   : > { %v1542_v52 = vmul.f32 1.442695, %v1530_v56 }
 0x710   : > { %v1522_v45 = vpop.xlane.xlu0 %1521 }
 0x711   : > { %v1532_v50 = vsub.f32 %v3746_v60, %v1522_v45  ;;  %3042 = vmatmul.mubr.msk.bf16.vlgmr.msra.gmra.mrb[32].mxu1 %vm318_vm0, %v1799_v44 }
 0x712   : > { %3045 = vmatprep.mubr.msk.bf16.mxu1 %vm318_vm0, %v1801_v42 }
 0x713   : > { %v3856_v54 = vpop.eup %3271  ;;  %v1546_v1 = vmul.f32 1.442695, %v1532_v50 }
 0x714   : > { %v1556_v57 = vsel %vm719_vm1, %v3856_v54, 0.0  ;;  %v3860_v43 = vpop.eup %3273 }
 0x715   : > { %3277 = vpow2.f32 %v1546_v1  ;;  %1557 = vadd.xlane.f32.xlu0 %v1556_v57  ;;  %v1550_v60 = vsel %vm719_vm1, %v3860_v43, 0.0 }
 0x716   : > { %3279 = vpow2.f32 %v1542_v52 }
 0x717   : > { %v3862_v62 = vpop.eup %3275 }
 0x718   : > { %v1559_v38 = vsel %vm719_vm1, %v3862_v62, 0.0 }
 0x719   : > { %1551 = vadd.xlane.f32.xlu0 %v1550_v60  ;;  %1560 = vadd.xlane.f32.xlu1 %v1559_v38 }
 0x71a   : > { %3046 = vmatmul.mubr.msk.bf16.gmra.mrb[36].mxu1 %vm318_vm0, %v1803_v3 }
 0x71f   : > { %v3869_v6 = vpop.eup %3277 }
 0x720   : > { %v1568_v9 = vsel %vm719_vm1, %v3869_v6, 0.0  ;;  %v3873_v11 = vpop.eup %3279 }
 0x721   : > { %1569 = vadd.xlane.f32.xlu0 %v1568_v9  ;;  %v1562_v12 = vsel %vm719_vm1, %v3873_v11, 0.0 }
 0x725   : > { %1563 = vadd.xlane.f32.xlu0 %v1562_v12 }
 0x735   : > { %v1507_v48 = vpop.xlane.xlu1 %1506 }
 0x736   : > { %v1527_v10 = vsub.f32 %v3744_v58, %v1507_v48  ;;  %v3174_v58 = vld [vmem:[%s4226_s2 + $0x18] sm:$0xff]  }
 0x737   : > { %2967 = vmatprep.subr.bf16.mxu0 %v3174_v58 }
 0x738   : > { %v1536_v8 = vmul.f32 1.442695, %v1527_v10  ;;  %2968 = vmatpush3.bf16.msra.mxu0 %v3174_v58 }
 0x739   : > { %2977 = vmatprep.subr.bf16.mxu0 %v3175_v5  ;;  %v1519_v61 = vpop.xlane.xlu1 %1518 }
 0x73a   : > { %3281 = vpow2.f32 %v1536_v8  ;;  %v1531_v14 = vsub.f32 %v3752_v0, %v1519_v61 }
 0x73b   : > { %1602 = vrot.lane.b32.xlu0 %v3556_v55, %s3385_s25 }
 0x73c   : > { %v1544_v16 = vmul.f32 1.442695, %v1531_v14 }
 0x73d   : > { %v1525_v41 = vpop.xlane.xlu1 %1524 }
 0x73e   : > { %v1533_v42 = vsub.f32 %v3750_v63, %v1525_v41 }
 0x740   : > { %v1548_v17 = vmul.f32 1.442695, %v1533_v42 }
 0x742   : > { %3283 = vpow2.f32 %v1548_v17 }
 0x743   : > { %3285 = vpow2.f32 %v1544_v16 }
 0x744   : > { %v3883_v47 = vpop.eup %3281 }
 0x745   : > { %v1553_v7 = vsel %vm719_vm1, %v3883_v47, 0.0 }
 0x746   : > { %1554 = vadd.xlane.f32.xlu1 %v1553_v7 }
 0x74c   : > { %v3899_v18 = vpop.eup %3283 }
 0x74d   : > { %v1571_v59 = vsel %vm719_vm1, %v3899_v18, 0.0  ;;  %v3903_v19 = vpop.eup %3285 }
 0x74e   : > { %v1565_v22 = vsel %vm719_vm1, %v3903_v19, 0.0 }
 0x757   : > { %1604 = vrot.lane.b32.xlu1 %v3554_v53, %s3385_s25 }
 0x75b   : > { %1606 = vrot.lane.b32.xlu1 %v3572_v4, %s3385_s25 }
 0x77f   : > { %1572 = vadd.xlane.f32.xlu1 %v1571_v59 }
 0x783   : > { %1566 = vadd.xlane.f32.xlu1 %v1565_v22 }
 0x794   : > { %1608 = vrot.lane.b32.xlu1 %v3569_v2, %s3385_s25 }
 0x7a2   : > { %v3909_v63 = vpop.xlane.xlu0 %1557 }
 0x7a6   : > { %v1552_v0 = vpop.xlane.xlu0 %1551  ;;  %v1561_v21 = vpop.xlane.xlu1 %1560 }
 0x7ae   : > { %v3911_v15 = vpop.xlane.xlu0 %1569 }
 0x7b2   : > { %v3916_v20 = vpop.xlane.xlu0 %1563 }
 0x7b6   : > { %v1603_v1 = vpop.permute.xlu0 %1602 }
 0x7cc   : > { %v2959_v13 = vpop.f32.mrb[24].mxu0 }
 0x7cd   : > { %v1180_v51 = vpop.f32.mrb[25].mxu0 }
 0x7ce   : > { %v2960_v39 = vpop.f32.mrb[26].mxu0 }
 0x7cf   : > { %v1212_v23 = vpack.c.bf16 %v2960_v39, %v2959_v13  ;;  %v1183_v49 = vpop.f32.mrb[27].mxu0 }
 0x7d0   : > { %v1211_v24 = vpack.c.bf16 %v1183_v49, %v1180_v51 }
 0x7d2   : > { %2969 = vmatprep.mubr.msk.bf16.mxu0 %vm318_vm0, %v1211_v24 }
 0x7d3   : > { %2970 = vmatmul.mubr.msk.bf16.vlgmr.msra.gmra.mrb[32].mxu0 %vm318_vm0, %v1212_v23  ;;  %v1555_v44 = vpop.xlane.xlu1 %1554 }
 0x7d4   : > { %2978 = vmatpush3.bf16.msra.mxu0 %v3175_v5  ;;  %v2963_v29 = vpop.f32.mrb[28].mxu0  ;;  %3287 = vrcp.f32 %v1555_v44 }
 0x7d5   : > { %v1196_v56 = vpop.f32.mrb[29].mxu0  ;;  %2979 = vmatprep.subr.bf16.mxu0 %v3176_v28  ;;  %3289 = vrcp.f32 %v1552_v0 }
 0x7d6   : > { %v2964_v45 = vpop.f32.mrb[30].mxu0  ;;  %3291 = vrcp.f32 %v1561_v21 }
 0x7d7   : > { %v1214_v50 = vpack.c.bf16 %v2964_v45, %v2963_v29  ;;  %v1199_v52 = vpop.f32.mrb[31].mxu0  ;;  %v1605_v60 = vpop.permute.xlu1 %1604  ;;  %3293 = vrcp.f32 %v3909_v63 }
 0x7d8   : > { %v1213_v57 = vpack.c.bf16 %v1199_v52, %v1196_v56  ;;  %2980 = vmatpush3.bf16.msra.mxu0 %v3176_v28 }
 0x7d9   : > { %3005 = vmatprep.subr.bf16.mxu0 %v1603_v1 }
 0x7da   : > { %2973 = vmatprep.mubr.msk.bf16.mxu0 %vm318_vm0, %v1213_v57 }
 0x7db   : > { %2974 = vmatmul.mubr.msk.bf16.gmra.mrb[36].mxu0 %vm318_vm0, %v1214_v50 }
 0x7dc   : > { %2981 = vmatprep.mubr.msk.bf16.mxu0 %vm318_vm0, %v897_v32 }
 0x7de   : > { %v3288_v38 = vpop.eup %3287 }
 0x7df   : > { %v3290_v9 = vpop.eup %3289  ;;  %v1591_v25 = vmul.f32 %v3288_v38, %v3883_v47 }
 0x7e0   : > { %v1590_v37 = vmul.f32 %v3290_v9, %v3860_v43  ;;  %v3292_v58 = vpop.eup %3291 }
 0x7e1   : > { %v3294_v61 = vpop.eup %3293  ;;  %v1593_v41 = vmul.f32 %v3292_v58, %v3862_v62 }
 0x7e2   : > { %v1598_v12 = vpack.c.bf16 %v1591_v25, %v1590_v37  ;;  %v1592_v14 = vmul.f32 %v3294_v61, %v3856_v54  ;;  %v3177_v54 = vld [vmem:[%s4226_s2 + $0x20] sm:$0xff]  }
 0x7e3   : > { %2982 = vmatmul.mubr.msk.bf16.vlgmr.msra.gmra.mrb[32].mxu0 %vm318_vm0, %v898_v30  ;;  %v1607_v30 = vpop.permute.xlu1 %1606 }
 0x7e4   : > { %3006 = vmatpush3.bf16.msra.mxu0 %v1603_v1  ;;  %2985 = vmatprep.mubr.msk.bf16.mxu0 %vm318_vm0, %v899_v40  ;;  %v3934_v3 = vpop.f32.mrb[32].mxu1  ;;  %v1599_v17 = vpack.c.bf16 %v1593_v41, %v1592_v14 }
 0x7e5   : > { %3007 = vmatprep.subr.bf16.mxu0 %v1605_v60  ;;  %v3936_v26 = vpop.f32.mrb[33].mxu1  ;;  %v1907_v40 = vsel %vm719_vm1, %v3934_v3, -inf }
 0x7e6   : > { %v3938_v31 = vpop.f32.mrb[34].mxu1  ;;  %v1901_v32 = vsel %vm719_vm1, %v3936_v26, -inf }
 0x7e7   : > { %1902 = vmax.xlane.f32.xlu0 %v1901_v32  ;;  %v3943_v27 = vpop.f32.mrb[35].mxu1  ;;  %v1910_v43 = vsel %vm719_vm1, %v3938_v31, -inf }
 0x7e8   : > { %3008 = vmatpush3.bf16.msra.mxu0 %v1605_v60  ;;  %v1904_v34 = vsel %vm719_vm1, %v3943_v27, -inf }
 0x7e9   : > { %3009 = vmatprep.subr.bf16.mxu0 %v1607_v30  ;;  %1905 = vmax.xlane.f32.xlu1 %v1904_v34 }
 0x7eb   : > { %2986 = vmatmul.mubr.msk.bf16.gmra.mrb[36].mxu0 %vm318_vm0, %v900_v36  ;;  %1908 = vmax.xlane.f32.xlu0 %v1907_v40 }
 0x7ec   : > { %3010 = vmatpush3.bf16.msra.mxu0 %v1607_v30  ;;  %3013 = vmatprep.mubr.msk.bf16.mxu0 %vm719_vm1, %v1598_v12 }
 0x7ed   : > { %v3955_v48 = vpop.f32.mrb[36].mxu1 }
 0x7ee   : > { %v3957_v10 = vpop.f32.mrb[37].mxu1  ;;  %v1919_v47 = vsel %vm719_vm1, %v3955_v48, -inf }
 0x7ef   : > { %v3961_v46 = vpop.f32.mrb[38].mxu1  ;;  %1911 = vmax.xlane.f32.xlu0 %v1910_v43  ;;  %v1913_v35 = vsel %vm719_vm1, %v3957_v10, -inf }
 0x7f0   : > { %v3963_v8 = vpop.f32.mrb[39].mxu1  ;;  %v1922_v36 = vsel %vm719_vm1, %v3961_v46, -inf }
 0x7f1   : > { %v1916_v33 = vsel %vm719_vm1, %v3963_v8, -inf }
 0x7f2   : > { %1917 = vmax.xlane.f32.xlu1 %v1916_v33 }
 0x7f3   : > { %1914 = vmax.xlane.f32.xlu0 %v1913_v35 }
 0x7f6   : > { %1923 = vmax.xlane.f32.xlu1 %v1922_v36 }
 0x7f7   : > { %1920 = vmax.xlane.f32.xlu0 %v1919_v47 }
 0x80c   : > { %v1573_v7 = vpop.xlane.xlu1 %1572 }
 0x80d   : > { %3295 = vrcp.f32 %v1573_v7 }
 0x80e   : > { %3297 = vrcp.f32 %v3916_v20 }
 0x80f   : > { %3299 = vrcp.f32 %v3911_v15 }
 0x810   : > { %v1567_v5 = vpop.xlane.xlu1 %1566 }
 0x811   : > { %3301 = vrcp.f32 %v1567_v5 }
 0x814   : > { %v1609_v42 = vpop.permute.xlu1 %1608 }
 0x815   : > { %3011 = vmatprep.subr.bf16.mxu0 %v1609_v42 }
 0x816   : > { %3012 = vmatpush3.bf16.msra.mxu0 %v1609_v42 }
 0x817   : > { %v3296_v16 = vpop.eup %3295  ;;  %3021 = vmatprep.subr.bf16.mxu0 %v3177_v54 }
 0x818   : > { %v3298_v59 = vpop.eup %3297  ;;  %v1597_v0 = vmul.f32 %v3296_v16, %v3899_v18 }
 0x819   : > { %3014 = vmatmul.mubr.msk.bf16.vlgmr.msra.gmra.mrb[40].mxu0 %vm719_vm1, %v1599_v17  ;;  %v3300_v22 = vpop.eup %3299  ;;  %v1594_v15 = vmul.f32 %v3298_v59, %v3873_v11  ;;  %v3178_v11 = vld [vmem:[%s4226_s2 + $0x28] sm:$0xff]  }
 0x81a   : > { %v1596_v62 = vmul.f32 %v3300_v22, %v3869_v6  ;;  %3022 = vmatpush3.bf16.msra.mxu0 %v3177_v54 }
 0x81b   : > { %v3302_v63 = vpop.eup %3301  ;;  %3023 = vmatprep.subr.bf16.mxu0 %v3178_v11 }
 0x81c   : > { %v1595_v13 = vmul.f32 %v3302_v63, %v3903_v19  ;;  %v1601_v39 = vpack.c.bf16 %v1597_v0, %v1596_v62 }
 0x81e   : > { %v1600_v51 = vpack.c.bf16 %v1595_v13, %v1594_v15  ;;  %3024 = vmatpush3.bf16.msra.mxu0 %v3178_v11 }
 0x820   : > { %3017 = vmatprep.mubr.msk.bf16.mxu0 %vm719_vm1, %v1600_v51 }
 0x821   : > { %3018 = vmatmul.mubr.msk.bf16.gmra.mrb[44].mxu0 %vm719_vm1, %v1601_v39 }
 0x874   : > { %v1903_v18 = vpop.xlane.xlu0 %1902 }
 0x875   : > { %v1925_v6 = vsub.f32 %v3936_v26, %v1903_v18 }
 0x876   : > { %v1906_v19 = vpop.xlane.xlu1 %1905 }
 0x877   : > { %v1933_v24 = vmul.f32 1.442695, %v1925_v6  ;;  %v1926_v28 = vsub.f32 %v3943_v27, %v1906_v19 }
 0x878   : > { %v1909_v23 = vpop.xlane.xlu0 %1908 }
 0x879   : > { %v1927_v49 = vsub.f32 %v3934_v3, %v1909_v23  ;;  %v1935_v56 = vmul.f32 1.442695, %v1926_v28 }
 0x87b   : > { %v1937_v21 = vmul.f32 1.442695, %v1927_v49 }
 0x87c   : > { %v1912_v20 = vpop.xlane.xlu0 %1911 }
 0x87d   : > { %3303 = vpow2.f32 %v1937_v21  ;;  %v1928_v29 = vsub.f32 %v3938_v31, %v1912_v20  ;;  %v3179_v21 = vld [vmem:[%s4226_s2 + $0x30] sm:$0xff]  }
 0x87e   : > { %3305 = vpow2.f32 %v1933_v24 }
 0x87f   : > { %v1939_v44 = vmul.f32 1.442695, %v1928_v29  ;;  %v1918_v12 = vpop.xlane.xlu1 %1917 }
 0x880   : > { %v1915_v45 = vpop.xlane.xlu0 %1914  ;;  %v1930_v43 = vsub.f32 %v3963_v8, %v1918_v12 }
 0x881   : > { %3307 = vpow2.f32 %v1939_v44  ;;  %v1929_v50 = vsub.f32 %v3957_v10, %v1915_v45  ;;  %v3180_v44 = vld [vmem:[%s4226_s2 + $0x38] sm:$0xff]  }
 0x882   : > { %3309 = vpow2.f32 %v1935_v56  ;;  %v1943_v35 = vmul.f32 1.442695, %v1930_v43 }
 0x883   : > { %v1941_v60 = vmul.f32 1.442695, %v1929_v50 }
 0x884   : > { %v1921_v52 = vpop.xlane.xlu0 %1920 }
 0x885   : > { %v1931_v1 = vsub.f32 %v3955_v48, %v1921_v52  ;;  %v1924_v48 = vpop.xlane.xlu1 %1923 }
 0x886   : > { %v1932_v10 = vsub.f32 %v3961_v46, %v1924_v48 }
 0x887   : > { %v3997_v57 = vpop.eup %3303  ;;  %v1945_v38 = vmul.f32 1.442695, %v1931_v1 }
 0x888   : > { %v1955_v3 = vsel %vm719_vm1, %v3997_v57, 0.0  ;;  %v4001_v9 = vpop.eup %3305  ;;  %v1947_v33 = vmul.f32 1.442695, %v1932_v10 }
 0x889   : > { %3311 = vpow2.f32 %v1945_v38  ;;  %1956 = vadd.xlane.f32.xlu0 %v1955_v3  ;;  %v1949_v31 = vsel %vm719_vm1, %v4001_v9, 0.0 }
 0x88a   : > { %3313 = vpow2.f32 %v1941_v60 }
 0x88b   : > { %v4003_v26 = vpop.eup %3307  ;;  %3315 = vpow2.f32 %v1947_v33 }
 0x88c   : > { %v1958_v32 = vsel %vm719_vm1, %v4003_v26, 0.0  ;;  %v3310_v25 = vpop.eup %3309  ;;  %3317 = vpow2.f32 %v1943_v35  ;;  %v2758_v35 = vld [vmem:[%s4227_s3] ss:$0 sm:$0xff] }
 0x88d   : > { %1950 = vadd.xlane.f32.xlu0 %v1949_v31  ;;  %1959 = vadd.xlane.f32.xlu1 %v1958_v32  ;;  %v1952_v27 = vsel %vm719_vm1, %v3310_v25, 0.0 }
 0x891   : > { %1953 = vadd.xlane.f32.xlu1 %v1952_v27 }
 0x893   : > { %v4010_v30 = vpop.eup %3311 }
 0x894   : > { %v1967_v34 = vsel %vm719_vm1, %v4010_v30, 0.0  ;;  %v4014_v37 = vpop.eup %3313 }
 0x895   : > { %1968 = vadd.xlane.f32.xlu0 %v1967_v34  ;;  %v1961_v40 = vsel %vm719_vm1, %v4014_v37, 0.0  ;;  %v4026_v36 = vpop.eup %3315 }
 0x896   : > { %v4030_v47 = vpop.eup %3317 }
 0x899   : > { %1962 = vadd.xlane.f32.xlu0 %v1961_v40 }
 0x8a2   : > { %2003 = vrot.lane.b32.xlu1 %v3554_v53, %s3386_s26  ;;  %v1970_v53 = vsel %vm719_vm1, %v4026_v36, 0.0 }
 0x8a6   : > { %2005 = vrot.lane.b32.xlu1 %v3572_v4, %s3386_s26 }
 0x8af   : > { %2001 = vrot.lane.b32.xlu0 %v3556_v55, %s3386_s26  ;;  %v1964_v55 = vsel %vm719_vm1, %v4030_v47, 0.0 }
 0x8ca   : > { %1971 = vadd.xlane.f32.xlu1 %v1970_v53  ;;  %v3367_v53 = vld [vmem:[%s3448_s11 + $0x10] sm:$0xff] }
 0x8ce   : > { %1965 = vadd.xlane.f32.xlu1 %v1964_v55  ;;  %v3368_v55 = vld [vmem:[%s3448_s11] sm:$0xff] }
 0x8df   : > { %2007 = vrot.lane.b32.xlu1 %v3569_v2, %s3386_s26 }
 0x8ec   : > { %v3015_v4 = vpop.f32.mrb[40].mxu0 }
 0x8ed   : > { %v1660_v46 = vpop.f32.mrb[41].mxu0 }
 0x8ee   : > { %v3016_v8 = vpop.f32.mrb[42].mxu0 }
 0x8ef   : > { %v1692_v7 = vpack.c.bf16 %v3016_v8, %v3015_v4  ;;  %v1663_v58 = vpop.f32.mrb[43].mxu0 }
 0x8f0   : > { %v1691_v5 = vpack.c.bf16 %v1663_v58, %v1660_v46  ;;  %v3369_v58 = vld [vmem:[%s3448_s11 + $0x8] sm:$0xff] }
 0x8f2   : > { %3025 = vmatprep.mubr.msk.bf16.mxu0 %vm318_vm0, %v1691_v5 }
 0x8f3   : > { %3026 = vmatmul.mubr.msk.bf16.vlgmr.msra.gmra.mrb[32].mxu0 %vm318_vm0, %v1692_v7 }
 0x8f4   : > { %v3019_v61 = vpop.f32.mrb[44].mxu0 }
 0x8f5   : > { %v1676_v41 = vpop.f32.mrb[45].mxu0 }
 0x8f6   : > { %v3020_v42 = vpop.f32.mrb[46].mxu0 }
 0x8f7   : > { %v1694_v14 = vpack.c.bf16 %v3020_v42, %v3019_v61  ;;  %v1679_v17 = vpop.f32.mrb[47].mxu0 }
 0x8f8   : > { %v1693_v16 = vpack.c.bf16 %v1679_v17, %v1676_v41  ;;  %v3370_v41 = vld [vmem:[%s3448_s11 + $0x18] sm:$0xff] }
 0x8fa   : > { %3029 = vmatprep.mubr.msk.bf16.mxu0 %vm318_vm0, %v1693_v16 }
 0x8fb   : > { %3030 = vmatmul.mubr.msk.bf16.gmra.mrb[36].mxu0 %vm318_vm0, %v1694_v14 }
 0x916   : > { %v1957_v2 = vpop.xlane.xlu0 %1956 }
 0x91a   : > { %v1951_v59 = vpop.xlane.xlu0 %1950  ;;  %v1960_v22 = vpop.xlane.xlu1 %1959 }
 0x91b   : > { %3319 = vrcp.f32 %v1951_v59 }
 0x91e   : > { %v1954_v63 = vpop.xlane.xlu1 %1953 }
 0x91f   : > { %3321 = vrcp.f32 %v1954_v63  ;;  %v3371_v63 = vld [vmem:[%s3448_s11 + $0x20] sm:$0xff] }
 0x920   : > { %3323 = vrcp.f32 %v1960_v22 }
 0x921   : > { %3325 = vrcp.f32 %v1957_v2 }
 0x922   : > { %v1969_v0 = vpop.xlane.xlu0 %1968  ;;  %v2004_v51 = vpop.permute.xlu1 %2003 }
 0x925   : > { %v3320_v13 = vpop.eup %3319 }
 0x926   : > { %v1963_v15 = vpop.xlane.xlu0 %1962  ;;  %v1989_v54 = vmul.f32 %v3320_v13, %v4001_v9  ;;  %v2006_v6 = vpop.permute.xlu1 %2005 }
 0x929   : > { %v3322_v62 = vpop.eup %3321 }
 0x92a   : > { %v2002_v39 = vpop.permute.xlu0 %2001  ;;  %v1990_v11 = vmul.f32 %v3322_v62, %v3310_v25  ;;  %v3324_v23 = vpop.eup %3323 }
 0x92b   : > { %3049 = vmatprep.subr.bf16.mxu0 %v2002_v39  ;;  %v3326_v24 = vpop.eup %3325  ;;  %v1992_v28 = vmul.f32 %v3324_v23, %v4003_v26 }
 0x92c   : > { %3050 = vmatpush3.bf16.msra.mxu0 %v2002_v39  ;;  %v1997_v18 = vpack.c.bf16 %v1990_v11, %v1989_v54  ;;  %v1991_v29 = vmul.f32 %v3326_v24, %v3997_v57  ;;  %v3373_v54 = vld [vmem:[%s3448_s11 + $0x28] sm:$0xff] }
 0x92d   : > { %3051 = vmatprep.subr.bf16.mxu0 %v2004_v51 }
 0x92e   : > { %3057 = vmatprep.mubr.msk.bf16.mxu0 %vm719_vm1, %v1997_v18  ;;  %v1998_v56 = vpack.c.bf16 %v1992_v28, %v1991_v29  ;;  %v3374_v18 = vld [vmem:[%s3448_s11 + $0x30] sm:$0xff] }
 0x930   : > { %3052 = vmatpush3.bf16.msra.mxu0 %v2004_v51  ;;  %v3372_v51 = vld [vmem:[%s3448_s11 + $0x38] sm:$0xff] }
 0x931   : > { %3053 = vmatprep.subr.bf16.mxu0 %v2006_v6 }
 0x934   : > { %3054 = vmatpush3.bf16.msra.mxu0 %v2006_v6 }
 0x957   : > { %v1972_v19 = vpop.xlane.xlu1 %1971 }
 0x958   : > { %3327 = vrcp.f32 %v1972_v19 }
 0x959   : > { %3329 = vrcp.f32 %v1963_v15 }
 0x95a   : > { %3331 = vrcp.f32 %v1969_v0 }
 0x95b   : > { %v1966_v49 = vpop.xlane.xlu1 %1965 }
 0x95c   : > { %3333 = vrcp.f32 %v1966_v49 }
 0x95f   : > { %v2008_v20 = vpop.permute.xlu1 %2007 }
 0x960   : > { %3055 = vmatprep.subr.bf16.mxu0 %v2008_v20 }
 0x961   : > { %3056 = vmatpush3.bf16.msra.mxu0 %v2008_v20 }
 0x962   : > { %3065 = vmatprep.subr.bf16.mxu0 %v3179_v21  ;;  %v3328_v45 = vpop.eup %3327 }
 0x963   : > { %v3330_v50 = vpop.eup %3329  ;;  %v1996_v60 = vmul.f32 %v3328_v45, %v4026_v36 }
 0x964   : > { %3058 = vmatmul.mubr.msk.bf16.vlgmr.msra.gmra.mrb[48].mxu0 %vm719_vm1, %v1998_v56  ;;  %v3332_v52 = vpop.eup %3331  ;;  %v1993_v57 = vmul.f32 %v3330_v50, %v4014_v37 }
 0x965   : > { %3066 = vmatpush3.bf16.msra.mxu0 %v3179_v21  ;;  %v1995_v3 = vmul.f32 %v3332_v52, %v4010_v30 }
 0x966   : > { %v3334_v1 = vpop.eup %3333  ;;  %3067 = vmatprep.subr.bf16.mxu0 %v3180_v44 }
 0x967   : > { %v1994_v38 = vmul.f32 %v3334_v1, %v4030_v47  ;;  %v2000_v26 = vpack.c.bf16 %v1996_v60, %v1995_v3 }
 0x969   : > { %v1999_v9 = vpack.c.bf16 %v1994_v38, %v1993_v57  ;;  %3068 = vmatpush3.bf16.msra.mxu0 %v3180_v44 }
 0x96b   : > { %3061 = vmatprep.mubr.msk.bf16.mxu0 %vm719_vm1, %v1999_v9 }
 0x96c   : > { %3062 = vmatmul.mubr.msk.bf16.gmra.mrb[52].mxu0 %vm719_vm1, %v2000_v26 }
 0xa37   : > { %v3059_v31 = vpop.f32.mrb[48].mxu0 }
 0xa38   : > { %v2059_v32 = vpop.f32.mrb[49].mxu0 }
 0xa39   : > { %v3060_v25 = vpop.f32.mrb[50].mxu0 }
 0xa3a   : > { %v2091_v27 = vpack.c.bf16 %v3060_v25, %v3059_v31  ;;  %v2062_v34 = vpop.f32.mrb[51].mxu0 }
 0xa3b   : > { %v2090_v40 = vpack.c.bf16 %v2062_v34, %v2059_v32 }
 0xa3d   : > { %3069 = vmatprep.mubr.msk.bf16.mxu0 %vm318_vm0, %v2090_v40 }
 0xa3e   : > { %3070 = vmatmul.mubr.msk.bf16.vlgmr.msra.gmra.mrb[32].mxu0 %vm318_vm0, %v2091_v27 }
 0xa3f   : > { %v3063_v30 = vpop.f32.mrb[52].mxu0 }
 0xa40   : > { %v2075_v37 = vpop.f32.mrb[53].mxu0 }
 0xa41   : > { %v3064_v12 = vpop.f32.mrb[54].mxu0 }
 0xa42   : > { %v2093_v48 = vpack.c.bf16 %v3064_v12, %v3063_v30  ;;  %v2078_v10 = vpop.f32.mrb[55].mxu0 }
 0xa43   : > { %v2092_v43 = vpack.c.bf16 %v2078_v10, %v2075_v37 }
 0xa45   : > { %3073 = vmatprep.mubr.msk.bf16.mxu0 %vm318_vm0, %v2092_v43 }
 0xa46   : > { %3074 = vmatmul.mubr.msk.bf16.gmra.mrb[36].mxu0 %vm318_vm0, %v2093_v48 }
 0xb11   : > { %v3071_v33 = vpop.f32.mrb[32].mxu0 }
 0xb12   : > { %v2156_v36 = vpop.f32.mrb[33].mxu0  ;;  %v2197_v47 = vadd.f32 %v3367_v53, %v3071_v33 }
 0xb13   : > { %v2195_v4 = vadd.f32 %v3368_v55, %v2156_v36  ;;  %v3072_v46 = vpop.f32.mrb[34].mxu0 }
 0xb14   : > { %v2159_v8 = vpop.f32.mrb[35].mxu0  ;;  %v4069_v61 = vadd.f32 %v2758_v35, %v2197_v47  ;;  %v2198_v42 = vadd.f32 %v3370_v41, %v3072_v46 }
 0xb15   : > { %v4066_v7 = vadd.f32 %v2758_v35, %v2195_v4  ;;  %v2196_v5 = vadd.f32 %v3369_v58, %v2159_v8 }
 0xb16   : > { %v4078_v22 = vadd.f32 %v2758_v35, %v2198_v42  ;;  %v2224_v13 = vsel %vm318_vm0, %v4069_v61, 0.0 }
 0xb17   : > { %v4072_v14 = vadd.f32 %v2758_v35, %v2196_v5  ;;  %v2218_v17 = vsel %vm318_vm0, %v4066_v7, 0.0 }
 0xb18   : > { %2219 = vadd.xlane.f32.xlu0 %v2218_v17  ;;  %v2227_v49 = vsel %vm318_vm0, %v4078_v22, 0.0 }
 0xb19   : > { %v3075_v16 = vpop.f32.mrb[36].mxu0  ;;  %v2221_v2 = vsel %vm318_vm0, %v4072_v14, 0.0 }
 0xb1a   : > { %2222 = vadd.xlane.f32.xlu1 %v2221_v2  ;;  %v2172_v59 = vpop.f32.mrb[37].mxu0  ;;  %v2201_v6 = vadd.f32 %v3374_v18, %v3075_v16 }
 0xb1b   : > { %v2199_v0 = vadd.f32 %v3371_v63, %v2172_v59  ;;  %v3076_v15 = vpop.f32.mrb[38].mxu0  ;;  %v3181_v63 = vld [vmem:[%s4228_s4] sm:$0xff]  }
 0xb1c   : > { %2225 = vadd.xlane.f32.xlu0 %v2224_v13  ;;  %v2175_v62 = vpop.f32.mrb[39].mxu0  ;;  %v2202_v39 = vadd.f32 %v3372_v51, %v3076_v15  ;;  %v4096_v21 = vadd.f32 %v2758_v35, %v2201_v6  ;;  %3077 = vmatprep.subr.bf16.mxu1 %v3181_v63  ;;  %v3183_v15 = vld [vmem:[%s4230_s6] sm:$0xff]  }
 0xb1d   : > { %v2200_v11 = vadd.f32 %v3373_v54, %v2175_v62  ;;  %v4086_v19 = vadd.f32 %v2758_v35, %v2199_v0  ;;  %3078 = vmatpush3.bf16.msra.mxu1 %v3181_v63  ;;  %v3182_v0 = vld [vmem:[%s4228_s4 + $0x8] sm:$0xff]  }
 0xb1e   : > { %v4092_v24 = vadd.f32 %v2758_v35, %v2202_v39  ;;  %v2236_v56 = vsel %vm318_vm0, %v4096_v21, 0.0  ;;  %3079 = vmatprep.subr.bf16.mxu1 %v3182_v0 }
 0xb1f   : > { %v4088_v23 = vadd.f32 %v2758_v35, %v2200_v11  ;;  %v2230_v20 = vsel %vm318_vm0, %v4086_v19, 0.0 }
 0xb20   : > { %2228 = vadd.xlane.f32.xlu0 %v2227_v49  ;;  %v2239_v29 = vsel %vm318_vm0, %v4092_v24, 0.0 }
 0xb21   : > { %v2233_v28 = vsel %vm318_vm0, %v4088_v23, 0.0  ;;  %3080 = vmatpush3.bf16.msra.mxu1 %v3182_v0 }
 0xb22   : > { %2234 = vadd.xlane.f32.xlu1 %v2233_v28  ;;  %3089 = vmatprep.subr.bf16.mxu1 %v3183_v15 }
 0xb24   : > { %2231 = vadd.xlane.f32.xlu0 %v2230_v20 }
 0xb26   : > { %2240 = vadd.xlane.f32.xlu1 %v2239_v29 }
 0xb28   : > { %2237 = vadd.xlane.f32.xlu0 %v2236_v56 }
 0xba5   : > { %v2220_v44 = vpop.xlane.xlu0 %2219 }
 0xba6   : > { %v2242_v45 = vmul.f32 0.03125, %v2220_v44 }
 0xba7   : > { %v2223_v50 = vpop.xlane.xlu1 %2222 }
 0xba8   : > { %v4105_v52 = vsub.f32 %v4066_v7, %v2242_v45  ;;  %v2243_v1 = vmul.f32 0.03125, %v2223_v50 }
 0xba9   : > { %v2226_v60 = vpop.xlane.xlu0 %2225 }
 0xbaa   : > { %v4108_v57 = vsub.f32 %v4072_v14, %v2243_v1  ;;  %v2244_v38 = vmul.f32 0.03125, %v2226_v60  ;;  %v2258_v3 = vmul.f32 %v4105_v52, %v4105_v52 }
 0xbac   : > { %v4113_v9 = vsub.f32 %v4069_v61, %v2244_v38  ;;  %v2266_v26 = vsel %vm318_vm0, %v2258_v3, 0.0  ;;  %v2259_v31 = vmul.f32 %v4108_v57, %v4108_v57 }
 0xbad   : > { %v2229_v32 = vpop.xlane.xlu0 %2228  ;;  %2267 = vadd.xlane.f32.xlu0 %v2266_v26 }
 0xbae   : > { %v2245_v25 = vmul.f32 0.03125, %v2229_v32  ;;  %v2269_v27 = vsel %vm318_vm0, %v2259_v31, 0.0  ;;  %v2260_v34 = vmul.f32 %v4113_v9, %v4113_v9 }
 0xbaf   : > { %2270 = vadd.xlane.f32.xlu1 %v2269_v27  ;;  %v2235_v40 = vpop.xlane.xlu1 %2234 }
 0xbb0   : > { %v4122_v30 = vsub.f32 %v4078_v22, %v2245_v25  ;;  %v2247_v37 = vmul.f32 0.03125, %v2235_v40  ;;  %v2272_v12 = vsel %vm318_vm0, %v2260_v34, 0.0 }
 0xbb1   : > { %2273 = vadd.xlane.f32.xlu0 %v2272_v12  ;;  %v2232_v48 = vpop.xlane.xlu0 %2231 }
 0xbb2   : > { %v4126_v10 = vsub.f32 %v4088_v23, %v2247_v37  ;;  %v2246_v43 = vmul.f32 0.03125, %v2232_v48  ;;  %v2261_v33 = vmul.f32 %v4122_v30, %v4122_v30 }
 0xbb3   : > { %v2241_v35 = vpop.xlane.xlu1 %2240 }
 0xbb4   : > { %v4131_v36 = vsub.f32 %v4086_v19, %v2246_v43  ;;  %v2249_v53 = vmul.f32 0.03125, %v2241_v35  ;;  %v2275_v47 = vsel %vm318_vm0, %v2261_v33, 0.0  ;;  %v2263_v55 = vmul.f32 %v4126_v10, %v4126_v10 }
 0xbb5   : > { %v2238_v4 = vpop.xlane.xlu0 %2237  ;;  %2276 = vadd.xlane.f32.xlu1 %v2275_v47 }
 0xbb6   : > { %v4137_v46 = vsub.f32 %v4092_v24, %v2249_v53  ;;  %v2248_v8 = vmul.f32 0.03125, %v2238_v4  ;;  %v2262_v58 = vmul.f32 %v4131_v36, %v4131_v36  ;;  %v2281_v42 = vsel %vm318_vm0, %v2263_v55, 0.0 }
 0xbb8   : > { %v4142_v5 = vsub.f32 %v4096_v21, %v2248_v8  ;;  %v2278_v41 = vsel %vm318_vm0, %v2262_v58, 0.0  ;;  %v2265_v17 = vmul.f32 %v4137_v46, %v4137_v46 }
 0xbb9   : > { %2279 = vadd.xlane.f32.xlu0 %v2278_v41  ;;  %2282 = vadd.xlane.f32.xlu1 %v2281_v42 }
 0xbba   : > { %v2264_v16 = vmul.f32 %v4142_v5, %v4142_v5  ;;  %v2287_v59 = vsel %vm318_vm0, %v2265_v17, 0.0  ;;  %v3189_v17 = vld [vmem:[%s4230_s6 + $0x30] sm:$0xff]  }
 0xbbc   : > { %v2284_v2 = vsel %vm318_vm0, %v2264_v16, 0.0  ;;  %v3190_v16 = vld [vmem:[%s4230_s6 + $0x38] sm:$0xff]  }
 0xbbd   : > { %2285 = vadd.xlane.f32.xlu0 %v2284_v2  ;;  %2288 = vadd.xlane.f32.xlu1 %v2287_v59  ;;  %v2759_v2 = vld [vmem:[%s4229_s5] ss:$0 sm:$0xff] }
 0xc3a   : > { %v2268_v13 = vpop.xlane.xlu0 %2267 }
 0xc3b   : > { %v2290_v62 = vmul.f32 0.03125, %v2268_v13 }
 0xc3c   : > { %v2271_v51 = vpop.xlane.xlu1 %2270 }
 0xc3d   : > { %v2298_v39 = vadd.f32 1e-05, %v2290_v62  ;;  %v2291_v54 = vmul.f32 0.03125, %v2271_v51 }
 0xc3e   : > { %v2274_v11 = vpop.xlane.xlu0 %2273 }
 0xc3f   : > { %3335 = vrsqrt.f32 %v2298_v39  ;;  %v2299_v18 = vadd.f32 1e-05, %v2291_v54  ;;  %v2292_v6 = vmul.f32 0.03125, %v2274_v11 }
 0xc41   : > { %3337 = vrsqrt.f32 %v2299_v18  ;;  %v2300_v49 = vadd.f32 1e-05, %v2292_v6 }
 0xc42   : > { %v2277_v28 = vpop.xlane.xlu1 %2276 }
 0xc43   : > { %v2293_v20 = vmul.f32 0.03125, %v2277_v28  ;;  %3339 = vrsqrt.f32 %v2300_v49 }
 0xc45   : > { %v2301_v29 = vadd.f32 1e-05, %v2293_v20 }
 0xc46   : > { %v2280_v56 = vpop.xlane.xlu0 %2279  ;;  %v2283_v44 = vpop.xlane.xlu1 %2282 }
 0xc47   : > { %3341 = vrsqrt.f32 %v2301_v29  ;;  %v2294_v45 = vmul.f32 0.03125, %v2280_v56  ;;  %v2295_v50 = vmul.f32 0.03125, %v2283_v44 }
 0xc49   : > { %v3336_v1 = vpop.eup %3335  ;;  %v2302_v60 = vadd.f32 1e-05, %v2294_v45  ;;  %v2303_v38 = vadd.f32 1e-05, %v2295_v50 }
 0xc4a   : > { %v2286_v3 = vpop.xlane.xlu0 %2285  ;;  %v2289_v26 = vpop.xlane.xlu1 %2288  ;;  %v2314_v27 = vmul.f32 %v3336_v1, %v4105_v52  ;;  %v3184_v52 = vld [vmem:[%s4230_s6 + $0x8] sm:$0xff]  }
 0xc4b   : > { %v3338_v31 = vpop.eup %3337  ;;  %3343 = vrsqrt.f32 %v2302_v60  ;;  %v2296_v32 = vmul.f32 0.03125, %v2286_v3  ;;  %v2297_v25 = vmul.f32 0.03125, %v2289_v26 }
 0xc4c   : > { %3345 = vrsqrt.f32 %v2303_v38  ;;  %v2315_v34 = vmul.f32 %v3338_v31, %v4108_v57 }
 0xc4d   : > { %v2304_v40 = vadd.f32 1e-05, %v2296_v32  ;;  %v2305_v37 = vadd.f32 1e-05, %v2297_v25  ;;  %v3340_v48 = vpop.eup %3339 }
 0xc4e   : > { %v2322_v12 = vpack.c.bf16 %v2315_v34, %v2314_v27  ;;  %v2316_v33 = vmul.f32 %v3340_v48, %v4113_v9 }
 0xc4f   : > { %3347 = vrsqrt.f32 %v2304_v40 }
 0xc50   : > { %3349 = vrsqrt.f32 %v2305_v37  ;;  %3081 = vmatprep.mubr.msk.bf16.mxu1 %vm318_vm0, %v2322_v12 }
 0xc51   : > { %v3342_v43 = vpop.eup %3341 }
 0xc52   : > { %v2317_v35 = vmul.f32 %v3342_v43, %v4122_v30 }
 0xc54   : > { %v2323_v53 = vpack.c.bf16 %v2317_v35, %v2316_v33 }
 0xc55   : > { %v3344_v47 = vpop.eup %3343 }
 0xc56   : > { %v3346_v57 = vpop.eup %3345  ;;  %3082 = vmatmul.mubr.msk.bf16.vlgmr.msra.gmra.mrb[40].mxu1 %vm318_vm0, %v2323_v53  ;;  %v2318_v55 = vmul.f32 %v3344_v47, %v4131_v36  ;;  %v3185_v36 = vld [vmem:[%s4230_s6 + $0x10] sm:$0xff]  }
 0xc57   : > { %v2319_v4 = vmul.f32 %v3346_v57, %v4126_v10  ;;  %3090 = vmatpush3.bf16.msra.mxu1 %v3183_v15  ;;  %v3186_v10 = vld [vmem:[%s4230_s6 + $0x18] sm:$0xff]  }
 0xc58   : > { %3091 = vmatprep.subr.bf16.mxu1 %v3184_v52 }
 0xc59   : > { %v3348_v8 = vpop.eup %3347  ;;  %v2324_v58 = vpack.c.bf16 %v2319_v4, %v2318_v55 }
 0xc5a   : > { %v3350_v9 = vpop.eup %3349  ;;  %v2320_v30 = vmul.f32 %v3348_v8, %v4142_v5  ;;  %v3188_v5 = vld [vmem:[%s4230_s6 + $0x28] sm:$0xff]  }
 0xc5b   : > { %3085 = vmatprep.mubr.msk.bf16.mxu1 %vm318_vm0, %v2324_v58  ;;  %v2321_v41 = vmul.f32 %v3350_v9, %v4137_v46  ;;  %3092 = vmatpush3.bf16.msra.mxu1 %v3184_v52  ;;  %v3187_v46 = vld [vmem:[%s4230_s6 + $0x20] sm:$0xff]  }
 0xc5c   : > { %3093 = vmatprep.subr.bf16.mxu1 %v3185_v36 }
 0xc5d   : > { %v2325_v42 = vpack.c.bf16 %v2321_v41, %v2320_v30 }
 0xc5f   : > { %3086 = vmatmul.mubr.msk.bf16.gmra.mrb[44].mxu1 %vm318_vm0, %v2325_v42 }
 0xc60   : > { %3094 = vmatpush3.bf16.msra.mxu1 %v3185_v36 }
 0xc61   : > { %3095 = vmatprep.subr.bf16.mxu1 %v3186_v10 }
 0xc64   : > { %3096 = vmatpush3.bf16.msra.mxu1 %v3186_v10 }
 0xc65   : > { %3097 = vmatprep.subr.bf16.mxu1 %v3187_v46 }
 0xc68   : > { %3098 = vmatpush3.bf16.msra.mxu1 %v3187_v46 }
 0xc69   : > { %3099 = vmatprep.subr.bf16.mxu1 %v3188_v5 }
 0xc6c   : > { %3100 = vmatpush3.bf16.msra.mxu1 %v3188_v5 }
 0xc6d   : > { %3101 = vmatprep.subr.bf16.mxu1 %v3189_v17 }
 0xc70   : > { %3102 = vmatpush3.bf16.msra.mxu1 %v3189_v17 }
 0xc71   : > { %3103 = vmatprep.subr.bf16.mxu1 %v3190_v16 }
 0xc74   : > { %3104 = vmatpush3.bf16.msra.mxu1 %v3190_v16 }
 0xd29   : > { %v3083_v59 = vpop.f32.mrb[40].mxu1 }
 0xd2a   : > { %v2404_v63 = vadd.f32 %v3083_v59, %v2759_v2  ;;  %v2395_v0 = vpop.f32.mrb[41].mxu1 }
 0xd2b   : > { %v2396_v15 = vadd.f32 %v2759_v2, %v2395_v0  ;;  %v3084_v13 = vpop.f32.mrb[42].mxu1 }
 0xd2c   : > { %v2437_v62 = vmul.f32 0.70710677, %v2404_v63  ;;  %v2407_v51 = vadd.f32 %v3084_v13, %v2759_v2  ;;  %v2398_v39 = vpop.f32.mrb[43].mxu1  ;;  %v2428_v40 = vmul.f32 0.5, %v2404_v63  ;;  %v2766_v13 = vld [vmem:[%s4231_s7] ss:$0 sm:$0xff] }
 0xd2d   : > { %v2435_v54 = vmul.f32 0.70710677, %v2396_v15  ;;  %v2399_v11 = vadd.f32 %v2759_v2, %v2398_v39  ;;  %v2426_v48 = vmul.f32 0.5, %v2396_v15 }
 0xd2e   : > { %3351 = verf.f32 %v2437_v62  ;;  %v2438_v18 = vmul.f32 0.70710677, %v2407_v51  ;;  %v2429_v37 = vmul.f32 0.5, %v2407_v51 }
 0xd2f   : > { %3353 = verf.f32 %v2435_v54  ;;  %v2436_v6 = vmul.f32 0.70710677, %v2399_v11  ;;  %v2427_v43 = vmul.f32 0.5, %v2399_v11 }
 0xd30   : > { %3355 = verf.f32 %v2438_v18 }
 0xd31   : > { %3357 = verf.f32 %v2436_v6 }
 0xd32   : > { %v3087_v49 = vpop.f32.mrb[44].mxu1 }
 0xd33   : > { %v2420_v28 = vadd.f32 %v3087_v49, %v2759_v2  ;;  %v2411_v20 = vpop.f32.mrb[45].mxu1 }
 0xd34   : > { %v2412_v29 = vadd.f32 %v2759_v2, %v2411_v20  ;;  %v3088_v56 = vpop.f32.mrb[46].mxu1 }
 0xd35   : > { %v2441_v44 = vmul.f32 0.70710677, %v2420_v28  ;;  %v2423_v45 = vadd.f32 %v3088_v56, %v2759_v2  ;;  %v2414_v50 = vpop.f32.mrb[47].mxu1  ;;  %v2432_v42 = vmul.f32 0.5, %v2420_v28 }
 0xd36   : > { %v2439_v1 = vmul.f32 0.70710677, %v2412_v29  ;;  %v2415_v60 = vadd.f32 %v2759_v2, %v2414_v50  ;;  %v2430_v46 = vmul.f32 0.5, %v2412_v29 }
 0xd37   : > { %3359 = verf.f32 %v2441_v44  ;;  %v2442_v38 = vmul.f32 0.70710677, %v2423_v45  ;;  %v2433_v36 = vmul.f32 0.5, %v2423_v45 }
 0xd38   : > { %v3352_v3 = vpop.eup %3351  ;;  %3361 = verf.f32 %v2439_v1  ;;  %v2440_v26 = vmul.f32 0.70710677, %v2415_v60  ;;  %v2431_v5 = vmul.f32 0.5, %v2415_v60 }
 0xd39   : > { %v3354_v31 = vpop.eup %3353  ;;  %v2453_v32 = vadd.f32 1.0, %v3352_v3  ;;  %3363 = verf.f32 %v2442_v38 }
 0xd3a   : > { %v3356_v25 = vpop.eup %3355  ;;  %v2451_v27 = vadd.f32 1.0, %v3354_v31  ;;  %3365 = verf.f32 %v2440_v26 }
 0xd3b   : > { %v3358_v34 = vpop.eup %3357  ;;  %v2454_v12 = vadd.f32 1.0, %v3356_v25  ;;  %v2461_v35 = vmul.f32 %v2453_v32, %v2428_v40 }
 0xd3c   : > { %v2452_v33 = vadd.f32 1.0, %v3358_v34  ;;  %v2459_v52 = vmul.f32 %v2451_v27, %v2426_v48 }
 0xd3d   : > { %v2462_v53 = vmul.f32 %v2454_v12, %v2429_v37 }
 0xd3e   : > { %v2460_v47 = vmul.f32 %v2452_v33, %v2427_v43 }
 0xd3f   : > { %v2468_v57 = vpack.c.bf16 %v2462_v53, %v2461_v35 }
 0xd40   : > { %v2467_v55 = vpack.c.bf16 %v2460_v47, %v2459_v52 }
 0xd41   : > { %v3360_v4 = vpop.eup %3359 }
 0xd42   : > { %v3362_v8 = vpop.eup %3361  ;;  %v2457_v58 = vadd.f32 1.0, %v3360_v4  ;;  %3105 = vmatprep.mubr.bf16.mxu1 %v2467_v55 }
 0xd43   : > { %v3364_v9 = vpop.eup %3363  ;;  %v2455_v30 = vadd.f32 1.0, %v3362_v8  ;;  %3106 = vmatmul.mubr.bf16.vlgmr.msra.gmra.mrb[48].mxu1 %v2468_v57 }
 0xd44   : > { %v3366_v41 = vpop.eup %3365  ;;  %v2458_v10 = vadd.f32 1.0, %v3364_v9  ;;  %v2465_v16 = vmul.f32 %v2457_v58, %v2432_v42 }
 0xd45   : > { %v2456_v17 = vadd.f32 1.0, %v3366_v41  ;;  %v2463_v59 = vmul.f32 %v2455_v30, %v2430_v46 }
 0xd46   : > { %v2466_v2 = vmul.f32 %v2458_v10, %v2433_v36 }
 0xd47   : > { %v2464_v63 = vmul.f32 %v2456_v17, %v2431_v5 }
 0xd48   : > { %v2470_v0 = vpack.c.bf16 %v2466_v2, %v2465_v16 }
 0xd49   : > { %v2469_v15 = vpack.c.bf16 %v2464_v63, %v2463_v59 }
 0xd4b   : > { %3109 = vmatprep.mubr.bf16.mxu1 %v2469_v15 }
 0xd4c   : > { %3110 = vmatmul.mubr.bf16.gmra.mrb[52].mxu1 %v2470_v0 }
 0xe16   : > { %v3107_v62 = vpop.f32.mrb[48].mxu1 }
 0xe17   : > { %v2585_v51 = vadd.f32 %v3107_v62, %v2766_v13  ;;  %v2576_v39 = vpop.f32.mrb[49].mxu1 }
 0xe18   : > { %v2577_v54 = vadd.f32 %v2766_v13, %v2576_v39  ;;  %v3108_v11 = vpop.f32.mrb[50].mxu1 }
 0xe19   : > { %v2609_v18 = vadd.f32 %v2585_v51, %v4069_v61  ;;  %v2588_v6 = vadd.f32 %v3108_v11, %v2766_v13  ;;  %v2579_v49 = vpop.f32.mrb[51].mxu1 }
 0xe1a   : > { %v2607_v28 = vadd.f32 %v2577_v54, %v4066_v7  ;;  %v2580_v20 = vadd.f32 %v2766_v13, %v2579_v49 }
 0xe1b   : > { %2617 = vst.msk [vmem:[%s307_s15 + $0x10] sm:$0xff] %vm318_vm0, %v2609_v18  ;;  %v2610_v29 = vadd.f32 %v2588_v6, %v4078_v22 }
 0xe1c   : > { %2615 = vst.msk [vmem:[%s307_s15] sm:$0xff] %vm318_vm0, %v2607_v28  ;;  %v2608_v56 = vadd.f32 %v2580_v20, %v4072_v14 }
 0xe1d   : > { %2618 = vst.msk [vmem:[%s307_s15 + $0x18] sm:$0xff] %vm318_vm0, %v2610_v29 }
 0xe1e   : > { %2616 = vst.msk [vmem:[%s307_s15 + $0x8] sm:$0xff] %vm318_vm0, %v2608_v56 }
 0xe1f   : > { %v3111_v44 = vpop.f32.mrb[52].mxu1 }
 0xe20   : > { %v2601_v45 = vadd.f32 %v3111_v44, %v2766_v13  ;;  %v2592_v61 = vpop.f32.mrb[53].mxu1 }
 0xe21   : > { %v2593_v50 = vadd.f32 %v2766_v13, %v2592_v61  ;;  %v3112_v1 = vpop.f32.mrb[54].mxu1 }
 0xe22   : > { %v2613_v7 = vadd.f32 %v2601_v45, %v4096_v21  ;;  %v2604_v60 = vadd.f32 %v3112_v1, %v2766_v13  ;;  %v2595_v38 = vpop.f32.mrb[55].mxu1 }
 0xe23   : > { %v2611_v3 = vadd.f32 %v2593_v50, %v4086_v19  ;;  %v2596_v22 = vadd.f32 %v2766_v13, %v2595_v38 }
 0xe24   : > { %2621 = vst.msk [vmem:[%s307_s15 + $0x30] sm:$0xff] %vm318_vm0, %v2613_v7  ;;  %v2614_v14 = vadd.f32 %v2604_v60, %v4092_v24 }
 0xe25   : > { %2619 = vst.msk [vmem:[%s307_s15 + $0x20] sm:$0xff] %vm318_vm0, %v2611_v3  ;;  %v2612_v26 = vadd.f32 %v2596_v22, %v4088_v23 }
 0xe26   : > { %2622 = vst.msk [vmem:[%s307_s15 + $0x38] sm:$0xff] %vm318_vm0, %v2614_v14 }
 0xe27   : > { %2620 = vst.msk [vmem:[%s307_s15 + $0x28] sm:$0xff] %vm318_vm0, %v2612_v26 }
 0xe28 PF: > { %s18_s27 = sadd.s32 1, %s3381_s27  }
 0xe29   : > { %p15_p4 = scmp.ge.s32.totalorder %s18_s27, 4  }
 0xe2b   :  { %17 = sbr.rel (!%p15_p4) target bundleno = 1 (0x1), region = 82 }

</bundles_post_ra>
